<compile_context>
chip_gen: v6e
topology: v6e:2x2x1
jax: 0.10.0
libtpu: 0.0.40
codegen_flags: <defaults>
</compile_context>

<pallas_src>
import functools
import math

import jax
import jax.numpy as jnp
from jax.experimental import pallas as pl
from jax.experimental.pallas import tpu as pltpu

LN_EPS = 1e-5  # PyTorch nn.LayerNorm default


def _layer_norm(x, gamma, beta):
    # x: (tq, D) f32; gamma/beta: (1, D) f32
    mean = jnp.mean(x, axis=-1, keepdims=True)
    var = jnp.mean((x - mean) ** 2, axis=-1, keepdims=True)
    inv = jax.lax.rsqrt(var + LN_EPS)
    return (x - mean) * inv * gamma + beta


def transformer_block_kernel(
    x_ref,
    wq_ref, bq_ref, wk_ref, bk_ref, wv_ref, bv_ref, wo_ref, bo_ref,
    g1_ref, be1_ref, w1_ref, bf1_ref, w2_ref, bf2_ref, g2_ref, be2_ref,
    out_ref,
    k_scratch, v_scratch, q_scratch, ctx_scratch,
    *, num_heads, head_dim, k_tile,
):
    S = x_ref.shape[1]
    tq = out_ref.shape[1]
    hd_pad = k_scratch.shape[2]
    padded = hd_pad != head_dim
    bf16 = jnp.bfloat16

    # ----- K/V projection for the WHOLE sequence: once per batch element ----
    # Chunked over S so the f32 projection temporaries stay bounded.
    @pl.when(pl.program_id(1) == 0)
    def _():
        if padded:
            # zero the pad lanes once so padded contraction depth is exact
            k_scratch[...] = jnp.zeros_like(k_scratch)
            v_scratch[...] = jnp.zeros_like(v_scratch)
        for s0 in range(0, S, k_tile):
            xc = x_ref[0, s0:s0 + k_tile, :].astype(bf16)
            kc = jnp.dot(xc, wk_ref[...],
                         preferred_element_type=jnp.float32) + bk_ref[...]
            vc = jnp.dot(xc, wv_ref[...],
                         preferred_element_type=jnp.float32) + bv_ref[...]
            for h in range(num_heads):
                sl = slice(h * head_dim, (h + 1) * head_dim)
                k_scratch[h, s0:s0 + k_tile, :head_dim] = kc[:, sl].astype(bf16)
                v_scratch[h, s0:s0 + k_tile, :head_dim] = vc[:, sl].astype(bf16)

    # ----- residual tile sliced out of the resident full-sequence block -----
    row0 = pl.multiple_of(pl.program_id(1) * tq, tq)
    x32 = x_ref[0, pl.ds(row0, tq), :].astype(jnp.float32)             # (tq, D)
    xb = x32.astype(bf16)

    # ----- Q projection for this tile, head-major (lane-padded) -------------
    q = jnp.dot(xb, wq_ref[...], preferred_element_type=jnp.float32) + bq_ref[...]
    if padded:
        q_scratch[...] = jnp.zeros_like(q_scratch)
    for h in range(num_heads):
        q_scratch[h, :, :head_dim] = q[:, h * head_dim:(h + 1) * head_dim].astype(bf16)

    # ----- flash-style online softmax over K tiles (all heads batched) ------
    scale = 1.0 / math.sqrt(head_dim)
    qh = q_scratch[...]                                                # (H, tq, hd_pad)
    m_i = jnp.full((num_heads, tq, 1), -jnp.inf, jnp.float32)
    l_i = jnp.zeros((num_heads, tq, 1), jnp.float32)
    acc = jnp.zeros((num_heads, tq, hd_pad), jnp.float32)
    for ki in range(0, S, k_tile):
        kb = k_scratch[:, ki:ki + k_tile, :]
        vb = v_scratch[:, ki:ki + k_tile, :]
        s = jnp.einsum("hqd,hkd->hqk", qh, kb,
                       preferred_element_type=jnp.float32) * scale     # (H, tq, tk)
        m_new = jnp.maximum(m_i, jnp.max(s, axis=-1, keepdims=True))
        alpha = jnp.exp(m_i - m_new)
        p = jnp.exp(s - m_new)
        l_i = alpha * l_i + jnp.sum(p, axis=-1, keepdims=True)
        acc = alpha * acc + jnp.einsum("hqk,hkd->hqd", p.astype(bf16), vb,
                                       preferred_element_type=jnp.float32)
        m_i = m_new
    ctx = acc * pl.reciprocal(l_i, approx=True)                        # (H, tq, hd_pad)

    # ----- output projection: concat heads along lanes, ONE full-depth D matmul
    for h in range(num_heads):
        ctx_scratch[:, h * head_dim:(h + 1) * head_dim] = \
            ctx[h, :, :head_dim].astype(bf16)
    attn = jnp.dot(ctx_scratch[...], wo_ref[...],
                   preferred_element_type=jnp.float32) + bo_ref[...]   # (tq, D)

    # ----- residual + LayerNorm 1 --------------------------------------------
    h1 = _layer_norm(x32 + attn, g1_ref[...], be1_ref[...])

    # ----- FeedForward: Linear -> ReLU -> Linear -----------------------------
    ff = jnp.dot(h1.astype(bf16), w1_ref[...],
                 preferred_element_type=jnp.float32) + bf1_ref[...]
    ff = jnp.maximum(ff, 0.0)
    ff = jnp.dot(ff.astype(bf16), w2_ref[...],
                 preferred_element_type=jnp.float32) + bf2_ref[...]

    # ----- residual + LayerNorm 2 --------------------------------------------
    out = _layer_norm(h1 + ff, g2_ref[...], be2_ref[...])
    out_ref[0] = out.astype(out_ref.dtype)


def _prep_weights(params):
    """Cast matmul weights to bf16 (MXU-native); biases/LN params stay f32."""
    bf, f32 = jnp.bfloat16, jnp.float32
    return [
        params["wq"].astype(bf), params["bq"].astype(f32),
        params["wk"].astype(bf), params["bk"].astype(f32),
        params["wv"].astype(bf), params["bv"].astype(f32),
        params["wo"].astype(bf), params["bo"].astype(f32),
        params["g1"].astype(f32), params["be1"].astype(f32),
        params["w1"].astype(bf), params["bf1"].astype(f32),
        params["w2"].astype(bf), params["bf2"].astype(f32),
        params["g2"].astype(f32), params["be2"].astype(f32),
    ]


def _vmem_capacity_bytes():
    try:
        return int(pltpu.get_tpu_info().vmem_capacity_bytes)
    except Exception:
        return 64 << 20  # conservative: v7x per-TensorCore VMEM


def transformer_block(x, params, *, num_heads, q_tile=None, k_tile=512):
    """Run one TransformerBlock via a single fused Pallas kernel."""
    B, S, D = x.shape
    assert D % num_heads == 0
    head_dim = D // num_heads
    hd_pad = ((head_dim + 127) // 128) * 128   # lane-aligned contraction depth
    F = params["w1"].shape[1]

    vmem_cap = _vmem_capacity_bytes()
    if q_tile is None:
        # 512 on 128-MiB chips (v5e/v6e), 256 on v7x (64 MiB).
        q_tile = 512 if vmem_cap >= (100 << 20) else 256
    tq = q_tile if (q_tile <= S and S % q_tile == 0) else S
    tk = k_tile if (k_tile <= S and S % k_tile == 0) else S
    n_q = S // tq

    weights = _prep_weights(params)

    def w_spec(arr):
        n = arr.ndim
        # Constant index_map: fetched once per call; single-buffered so the
        # weights occupy half the VMEM the default double-buffering would.
        return pl.BlockSpec(arr.shape, lambda b, qi, _n=n: (0,) * _n,
                            pipeline_mode=pl.Buffered(1))

    kernel = functools.partial(
        transformer_block_kernel,
        num_heads=num_heads, head_dim=head_dim, k_tile=tk)

    # ---- VMEM accounting (weights single-buffered, x/out double-buffered,
    #      persistent scratch, plus in-kernel temporaries) ----
    w_bytes = sum(int(w.size) * w.dtype.itemsize for w in weights)
    x_bytes = 2 * S * D * x.dtype.itemsize
    out_bytes = 2 * tq * D * x.dtype.itemsize
    scratch_bytes = (2 * num_heads * S * hd_pad
                     + num_heads * tq * hd_pad + tq * D) * 2
    temp_bytes = (2 * num_heads * tq * tk * 4        # scores + probs (one K tile)
                  + 2 * num_heads * tq * hd_pad * 4  # online-softmax acc + ctx
                  + 2 * tk * D * 4                   # K/V projection chunk temps
                  + 2 * tq * F * 4                   # FFN hidden (pre/post ReLU)
                  + 4 * tq * D * 4)                  # misc f32 row tiles
    vmem_needed = w_bytes + x_bytes + out_bytes + scratch_bytes + temp_bytes + (4 << 20)
    vmem_limit = int(max(min(vmem_needed, vmem_cap - (8 << 20)), 16 << 20))

    # ---- advisory cost estimate
    flops = int(B * (8 * S * D * D + 4 * S * S * D + 4 * S * D * F))
    transcendentals = int(B * num_heads * S * S)
    bytes_accessed = int(2 * B * S * D * x.dtype.itemsize + w_bytes)

    return pl.pallas_call(
        kernel,
        out_shape=jax.ShapeDtypeStruct((B, S, D), x.dtype),
        grid_spec=pltpu.PrefetchScalarGridSpec(
            num_scalar_prefetch=0,
            grid=(B, n_q),
            in_specs=[pl.BlockSpec((1, S, D), lambda b, qi: (b, 0, 0))]
                     + [w_spec(w) for w in weights],
            out_specs=pl.BlockSpec((1, tq, D), lambda b, qi: (b, qi, 0)),
            scratch_shapes=[
                pltpu.VMEM((num_heads, S, hd_pad), jnp.bfloat16),   # K (head-major)
                pltpu.VMEM((num_heads, S, hd_pad), jnp.bfloat16),   # V (head-major)
                pltpu.VMEM((num_heads, tq, hd_pad), jnp.bfloat16),  # Q (head-major)
                pltpu.VMEM((tq, D), jnp.bfloat16),                  # concat(heads) ctx
            ],
        ),
        compiler_params=pltpu.CompilerParams(
            # batch axis parallel (megacore); q axis carries the K/V scratch.
            dimension_semantics=("parallel", "arbitrary"),
            vmem_limit_bytes=vmem_limit,
        ),
        cost_estimate=pl.CostEstimate(
            flops=flops, transcendentals=transcendentals,
            bytes_accessed=bytes_accessed),
    )(x, *weights)


def init_block_params(key, embedding_dim, ff_dim):
    ks = jax.random.split(key, 6)
    D, F = embedding_dim, ff_dim
    s = 0.02

    def lin(k, din, dout):
        return jax.random.normal(k, (din, dout), jnp.float32) * s

    return {
        "wq": lin(ks[0], D, D), "bq": jnp.zeros((1, D), jnp.float32),
        "wk": lin(ks[1], D, D), "bk": jnp.zeros((1, D), jnp.float32),
        "wv": lin(ks[2], D, D), "bv": jnp.zeros((1, D), jnp.float32),
        "wo": lin(ks[3], D, D), "bo": jnp.zeros((1, D), jnp.float32),
        "g1": jnp.ones((1, D), jnp.float32), "be1": jnp.zeros((1, D), jnp.float32),
        "w1": lin(ks[4], D, F), "bf1": jnp.zeros((1, F), jnp.float32),
        "w2": lin(ks[5], F, D), "bf2": jnp.zeros((1, D), jnp.float32),
        "g2": jnp.ones((1, D), jnp.float32), "be2": jnp.zeros((1, D), jnp.float32),
    }


def transformer(x, all_params, *, num_heads):
    for params in all_params:
        x = transformer_block(x, params, num_heads=num_heads)
    return x


# Pure-JAX reference mirroring the kernel's bf16-operand / f32-accumulate math.
def _ref_block(x, p, num_heads):
    B, S, D = x.shape
    hd = D // num_heads
    bf = jnp.bfloat16

    def mm(a, w):
        return jnp.dot(a.astype(bf), w.astype(bf),
                       preferred_element_type=jnp.float32)

    q = mm(x, p["wq"]) + p["bq"]
    k = mm(x, p["wk"]) + p["bk"]
    v = mm(x, p["wv"]) + p["bv"]
    qh = q.astype(bf).reshape(B, S, num_heads, hd)
    kh = k.astype(bf).reshape(B, S, num_heads, hd)
    vh = v.astype(bf).reshape(B, S, num_heads, hd)
    s = jnp.einsum("bqhd,bkhd->bhqk", qh, kh,
                   preferred_element_type=jnp.float32) / math.sqrt(hd)
    a = jax.nn.softmax(s, axis=-1)
    ctx = jnp.einsum("bhqk,bkhd->bqhd", a.astype(bf), vh,
                     preferred_element_type=jnp.float32).reshape(B, S, D)
    attn = mm(ctx, p["wo"]) + p["bo"]

    def ln(y, g, b):
        m = y.mean(-1, keepdims=True)
        var = ((y - m) ** 2).mean(-1, keepdims=True)
        return (y - m) * jax.lax.rsqrt(var + LN_EPS) * g + b

    h1 = ln(x + attn, p["g1"], p["be1"])
    ff = jnp.maximum(mm(h1, p["w1"]) + p["bf1"], 0.0)
    ff = mm(ff, p["w2"]) + p["bf2"]
    return ln(h1 + ff, p["g2"], p["be2"])


if __name__ == "__main__":
    B, S = 2, 8
    embedding_dim, num_heads, ff_dim, num_layers = 32, 4, 64, 2

    root = jax.random.PRNGKey(0)
    k_x, k_p = jax.random.split(root)
    x = jax.random.normal(k_x, (B, S, embedding_dim), jnp.float32)

    layer_keys = jax.random.split(k_p, num_layers)
    all_params = [init_block_params(k, embedding_dim, ff_dim) for k in layer_keys]

    out = transformer(x, all_params, num_heads=num_heads)
    out = jax.block_until_ready(out)

    # sanity check against bf16-mirroring pure-JAX reference
    ref = x
    for p in all_params:
        ref = _ref_block(ref, p, num_heads)
    assert out.shape == (B, S, embedding_dim)
    assert jnp.allclose(out, ref, atol=1e-2, rtol=1e-2), "mismatch vs reference"

    print("KERNEL_OK")
</pallas_src>

<mosaic_0001>
module attributes {stable_mosaic.version = 11 : i64} {
  func.func @transformer_block_kernel(%arg0: i32, %arg1: i32, %arg2: memref<1x8x32xf32, #tpu.memory_space<vmem>>, %arg3: memref<32x32xbf16, #tpu.memory_space<vmem>>, %arg4: memref<1x32xf32, #tpu.memory_space<vmem>>, %arg5: memref<32x32xbf16, #tpu.memory_space<vmem>>, %arg6: memref<1x32xf32, #tpu.memory_space<vmem>>, %arg7: memref<32x32xbf16, #tpu.memory_space<vmem>>, %arg8: memref<1x32xf32, #tpu.memory_space<vmem>>, %arg9: memref<32x32xbf16, #tpu.memory_space<vmem>>, %arg10: memref<1x32xf32, #tpu.memory_space<vmem>>, %arg11: memref<1x32xf32, #tpu.memory_space<vmem>>, %arg12: memref<1x32xf32, #tpu.memory_space<vmem>>, %arg13: memref<32x64xbf16, #tpu.memory_space<vmem>>, %arg14: memref<1x64xf32, #tpu.memory_space<vmem>>, %arg15: memref<64x32xbf16, #tpu.memory_space<vmem>>, %arg16: memref<1x32xf32, #tpu.memory_space<vmem>>, %arg17: memref<1x32xf32, #tpu.memory_space<vmem>>, %arg18: memref<1x32xf32, #tpu.memory_space<vmem>>, %arg19: memref<1x8x32xf32, #tpu.memory_space<vmem>>, %arg20: memref<4x8x128xbf16, #tpu.memory_space<vmem>>, %arg21: memref<4x8x128xbf16, #tpu.memory_space<vmem>>, %arg22: memref<4x8x128xbf16, #tpu.memory_space<vmem>>, %arg23: memref<8x32xbf16, #tpu.memory_space<vmem>>) attributes {dimension_semantics = [#tpu.dimension_semantics<parallel>, #tpu.dimension_semantics<arbitrary>], iteration_bounds = array<i64: 2, 1>, scalar_prefetch = 0 : i64, scratch_operands = 4 : i64, tpu.core_type = #tpu.core_type<tc>, window_params = [{transform_indices = @transform_0, window_bounds = array<i64: 1, 8, 32>}, {pipeline_mode = #tpu.pipeline_mode<synchronous>, transform_indices = @transform_1, window_bounds = array<i64: 32, 32>}, {pipeline_mode = #tpu.pipeline_mode<synchronous>, transform_indices = @transform_2, window_bounds = array<i64: 1, 32>}, {pipeline_mode = #tpu.pipeline_mode<synchronous>, transform_indices = @transform_3, window_bounds = array<i64: 32, 32>}, {pipeline_mode = #tpu.pipeline_mode<synchronous>, transform_indices = @transform_4, window_bounds = array<i64: 1, 32>}, {pipeline_mode = #tpu.pipeline_mode<synchronous>, transform_indices = @transform_5, window_bounds = array<i64: 32, 32>}, {pipeline_mode = #tpu.pipeline_mode<synchronous>, transform_indices = @transform_6, window_bounds = array<i64: 1, 32>}, {pipeline_mode = #tpu.pipeline_mode<synchronous>, transform_indices = @transform_7, window_bounds = array<i64: 32, 32>}, {pipeline_mode = #tpu.pipeline_mode<synchronous>, transform_indices = @transform_8, window_bounds = array<i64: 1, 32>}, {pipeline_mode = #tpu.pipeline_mode<synchronous>, transform_indices = @transform_9, window_bounds = array<i64: 1, 32>}, {pipeline_mode = #tpu.pipeline_mode<synchronous>, transform_indices = @transform_10, window_bounds = array<i64: 1, 32>}, {pipeline_mode = #tpu.pipeline_mode<synchronous>, transform_indices = @transform_11, window_bounds = array<i64: 32, 64>}, {pipeline_mode = #tpu.pipeline_mode<synchronous>, transform_indices = @transform_12, window_bounds = array<i64: 1, 64>}, {pipeline_mode = #tpu.pipeline_mode<synchronous>, transform_indices = @transform_13, window_bounds = array<i64: 64, 32>}, {pipeline_mode = #tpu.pipeline_mode<synchronous>, transform_indices = @transform_14, window_bounds = array<i64: 1, 32>}, {pipeline_mode = #tpu.pipeline_mode<synchronous>, transform_indices = @transform_15, window_bounds = array<i64: 1, 32>}, {pipeline_mode = #tpu.pipeline_mode<synchronous>, transform_indices = @transform_16, window_bounds = array<i64: 1, 32>}, {transform_indices = @transform_17, window_bounds = array<i64: 1, 8, 32>}]} {
    %c0_i32 = arith.constant 0 : i32
    %0 = arith.cmpi eq, %arg1, %c0_i32 : i32
    %1 = arith.extui %0 : i1 to i32
    %c0_i32_0 = arith.constant 0 : i32
    %2 = arith.cmpi ne, %1, %c0_i32_0 : i32
    scf.if %2 {
      %cst_80 = arith.constant 0.000000e+00 : bf16
      %154 = vector.broadcast %cst_80 : bf16 to vector<4x8x128xbf16>
      %c0_81 = arith.constant 0 : index
      %c0_82 = arith.constant 0 : index
      %c0_83 = arith.constant 0 : index
      %155 = vector.load %arg20[%c0_81, %c0_82, %c0_83] : memref<4x8x128xbf16, #tpu.memory_space<vmem>>, vector<4x8x128xbf16>
      tpu.vector_store %arg20[%c0_81, %c0_82, %c0_83], %154 {strides = array<i32>} : memref<4x8x128xbf16, #tpu.memory_space<vmem>>, vector<4x8x128xbf16>,
      %cst_84 = arith.constant 0.000000e+00 : bf16
      %156 = vector.broadcast %cst_84 : bf16 to vector<4x8x128xbf16>
      %c0_85 = arith.constant 0 : index
      %c0_86 = arith.constant 0 : index
      %c0_87 = arith.constant 0 : index
      %157 = vector.load %arg21[%c0_85, %c0_86, %c0_87] : memref<4x8x128xbf16, #tpu.memory_space<vmem>>, vector<4x8x128xbf16>
      tpu.vector_store %arg21[%c0_85, %c0_86, %c0_87], %156 {strides = array<i32>} : memref<4x8x128xbf16, #tpu.memory_space<vmem>>, vector<4x8x128xbf16>,
      %c0_88 = arith.constant 0 : index
      %c0_89 = arith.constant 0 : index
      %c0_90 = arith.constant 0 : index
      %158 = vector.load %arg2[%c0_88, %c0_89, %c0_90] : memref<1x8x32xf32, #tpu.memory_space<vmem>>, vector<1x8x32xf32>
      %159 = vector.shape_cast %158 : vector<1x8x32xf32> to vector<8x32xf32>
      %160 = arith.truncf %159 : vector<8x32xf32> to vector<8x32xbf16>
      %c0_91 = arith.constant 0 : index
      %c0_92 = arith.constant 0 : index
      %161 = vector.load %arg5[%c0_91, %c0_92] : memref<32x32xbf16, #tpu.memory_space<vmem>>, vector<32x32xbf16>
      %cst_93 = arith.constant dense<0.000000e+00> : vector<8x32xf32>
      %162 = tpu.matmul %160, %161, %cst_93 {dimension_numbers = #tpu.dot_dimension_numbers<[1], [0], [0], [1], [0, 0, 1, 1], [], []>} : vector<8x32xbf16>, vector<32x32xbf16>, vector<8x32xf32> -> vector<8x32xf32>
      %c0_94 = arith.constant 0 : index
      %c0_95 = arith.constant 0 : index
      %163 = vector.load %arg6[%c0_94, %c0_95] : memref<1x32xf32, #tpu.memory_space<vmem>>, vector<1x32xf32>
      %164 = vector.broadcast %163 : vector<1x32xf32> to vector<8x32xf32>
      %165 = arith.addf %162, %164 : vector<8x32xf32>
      %c0_96 = arith.constant 0 : index
      %c0_97 = arith.constant 0 : index
      %166 = vector.load %arg7[%c0_96, %c0_97] : memref<32x32xbf16, #tpu.memory_space<vmem>>, vector<32x32xbf16>
      %cst_98 = arith.constant dense<0.000000e+00> : vector<8x32xf32>
      %167 = tpu.matmul %160, %166, %cst_98 {dimension_numbers = #tpu.dot_dimension_numbers<[1], [0], [0], [1], [0, 0, 1, 1], [], []>} : vector<8x32xbf16>, vector<32x32xbf16>, vector<8x32xf32> -> vector<8x32xf32>
      %c0_99 = arith.constant 0 : index
      %c0_100 = arith.constant 0 : index
      %168 = vector.load %arg8[%c0_99, %c0_100] : memref<1x32xf32, #tpu.memory_space<vmem>>, vector<1x32xf32>
      %169 = vector.broadcast %168 : vector<1x32xf32> to vector<8x32xf32>
      %170 = arith.addf %167, %169 : vector<8x32xf32>
      %171 = vector.extract_strided_slice %165 {offsets = [0, 0], sizes = [8, 8], strides = [1, 1]} : vector<8x32xf32> to vector<8x8xf32>
      %172 = arith.truncf %171 : vector<8x8xf32> to vector<8x8xbf16>
      %c0_101 = arith.constant 0 : index
      %c0_102 = arith.constant 0 : index
      %c0_103 = arith.constant 0 : index
      %173 = vector.load %arg20[%c0_101, %c0_102, %c0_103] : memref<4x8x128xbf16, #tpu.memory_space<vmem>>, vector<1x8x8xbf16>
      %174 = vector.shape_cast %173 : vector<1x8x8xbf16> to vector<8x8xbf16>
      %175 = vector.shape_cast %172 : vector<8x8xbf16> to vector<1x8x8xbf16>
      tpu.vector_store %arg20[%c0_101, %c0_102, %c0_103], %175 {strides = array<i32>} : memref<4x8x128xbf16, #tpu.memory_space<vmem>>, vector<1x8x8xbf16>,
      %176 = vector.extract_strided_slice %170 {offsets = [0, 0], sizes = [8, 8], strides = [1, 1]} : vector<8x32xf32> to vector<8x8xf32>
      %177 = arith.truncf %176 : vector<8x8xf32> to vector<8x8xbf16>
      %c0_104 = arith.constant 0 : index
      %c0_105 = arith.constant 0 : index
      %c0_106 = arith.constant 0 : index
      %178 = vector.load %arg21[%c0_104, %c0_105, %c0_106] : memref<4x8x128xbf16, #tpu.memory_space<vmem>>, vector<1x8x8xbf16>
      %179 = vector.shape_cast %178 : vector<1x8x8xbf16> to vector<8x8xbf16>
      %180 = vector.shape_cast %177 : vector<8x8xbf16> to vector<1x8x8xbf16>
      tpu.vector_store %arg21[%c0_104, %c0_105, %c0_106], %180 {strides = array<i32>} : memref<4x8x128xbf16, #tpu.memory_space<vmem>>, vector<1x8x8xbf16>,
      %181 = vector.extract_strided_slice %165 {offsets = [0, 8], sizes = [8, 8], strides = [1, 1]} : vector<8x32xf32> to vector<8x8xf32>
      %182 = arith.truncf %181 : vector<8x8xf32> to vector<8x8xbf16>
      %c1_107 = arith.constant 1 : index
      %c0_108 = arith.constant 0 : index
      %c0_109 = arith.constant 0 : index
      %183 = vector.load %arg20[%c1_107, %c0_108, %c0_109] : memref<4x8x128xbf16, #tpu.memory_space<vmem>>, vector<1x8x8xbf16>
      %184 = vector.shape_cast %183 : vector<1x8x8xbf16> to vector<8x8xbf16>
      %185 = vector.shape_cast %182 : vector<8x8xbf16> to vector<1x8x8xbf16>
      tpu.vector_store %arg20[%c1_107, %c0_108, %c0_109], %185 {strides = array<i32>} : memref<4x8x128xbf16, #tpu.memory_space<vmem>>, vector<1x8x8xbf16>,
      %186 = vector.extract_strided_slice %170 {offsets = [0, 8], sizes = [8, 8], strides = [1, 1]} : vector<8x32xf32> to vector<8x8xf32>
      %187 = arith.truncf %186 : vector<8x8xf32> to vector<8x8xbf16>
      %c1_110 = arith.constant 1 : index
      %c0_111 = arith.constant 0 : index
      %c0_112 = arith.constant 0 : index
      %188 = vector.load %arg21[%c1_110, %c0_111, %c0_112] : memref<4x8x128xbf16, #tpu.memory_space<vmem>>, vector<1x8x8xbf16>
      %189 = vector.shape_cast %188 : vector<1x8x8xbf16> to vector<8x8xbf16>
      %190 = vector.shape_cast %187 : vector<8x8xbf16> to vector<1x8x8xbf16>
      tpu.vector_store %arg21[%c1_110, %c0_111, %c0_112], %190 {strides = array<i32>} : memref<4x8x128xbf16, #tpu.memory_space<vmem>>, vector<1x8x8xbf16>,
      %191 = vector.extract_strided_slice %165 {offsets = [0, 16], sizes = [8, 8], strides = [1, 1]} : vector<8x32xf32> to vector<8x8xf32>
      %192 = arith.truncf %191 : vector<8x8xf32> to vector<8x8xbf16>
      %c2_113 = arith.constant 2 : index
      %c0_114 = arith.constant 0 : index
      %c0_115 = arith.constant 0 : index
      %193 = vector.load %arg20[%c2_113, %c0_114, %c0_115] : memref<4x8x128xbf16, #tpu.memory_space<vmem>>, vector<1x8x8xbf16>
      %194 = vector.shape_cast %193 : vector<1x8x8xbf16> to vector<8x8xbf16>
      %195 = vector.shape_cast %192 : vector<8x8xbf16> to vector<1x8x8xbf16>
      tpu.vector_store %arg20[%c2_113, %c0_114, %c0_115], %195 {strides = array<i32>} : memref<4x8x128xbf16, #tpu.memory_space<vmem>>, vector<1x8x8xbf16>,
      %196 = vector.extract_strided_slice %170 {offsets = [0, 16], sizes = [8, 8], strides = [1, 1]} : vector<8x32xf32> to vector<8x8xf32>
      %197 = arith.truncf %196 : vector<8x8xf32> to vector<8x8xbf16>
      %c2_116 = arith.constant 2 : index
      %c0_117 = arith.constant 0 : index
      %c0_118 = arith.constant 0 : index
      %198 = vector.load %arg21[%c2_116, %c0_117, %c0_118] : memref<4x8x128xbf16, #tpu.memory_space<vmem>>, vector<1x8x8xbf16>
      %199 = vector.shape_cast %198 : vector<1x8x8xbf16> to vector<8x8xbf16>
      %200 = vector.shape_cast %197 : vector<8x8xbf16> to vector<1x8x8xbf16>
      tpu.vector_store %arg21[%c2_116, %c0_117, %c0_118], %200 {strides = array<i32>} : memref<4x8x128xbf16, #tpu.memory_space<vmem>>, vector<1x8x8xbf16>,
      %201 = vector.extract_strided_slice %165 {offsets = [0, 24], sizes = [8, 8], strides = [1, 1]} : vector<8x32xf32> to vector<8x8xf32>
      %202 = arith.truncf %201 : vector<8x8xf32> to vector<8x8xbf16>
      %c3_119 = arith.constant 3 : index
      %c0_120 = arith.constant 0 : index
      %c0_121 = arith.constant 0 : index
      %203 = vector.load %arg20[%c3_119, %c0_120, %c0_121] : memref<4x8x128xbf16, #tpu.memory_space<vmem>>, vector<1x8x8xbf16>
      %204 = vector.shape_cast %203 : vector<1x8x8xbf16> to vector<8x8xbf16>
      %205 = vector.shape_cast %202 : vector<8x8xbf16> to vector<1x8x8xbf16>
      tpu.vector_store %arg20[%c3_119, %c0_120, %c0_121], %205 {strides = array<i32>} : memref<4x8x128xbf16, #tpu.memory_space<vmem>>, vector<1x8x8xbf16>,
      %206 = vector.extract_strided_slice %170 {offsets = [0, 24], sizes = [8, 8], strides = [1, 1]} : vector<8x32xf32> to vector<8x8xf32>
      %207 = arith.truncf %206 : vector<8x8xf32> to vector<8x8xbf16>
      %c3_122 = arith.constant 3 : index
      %c0_123 = arith.constant 0 : index
      %c0_124 = arith.constant 0 : index
      %208 = vector.load %arg21[%c3_122, %c0_123, %c0_124] : memref<4x8x128xbf16, #tpu.memory_space<vmem>>, vector<1x8x8xbf16>
      %209 = vector.shape_cast %208 : vector<1x8x8xbf16> to vector<8x8xbf16>
      %210 = vector.shape_cast %207 : vector<8x8xbf16> to vector<1x8x8xbf16>
      tpu.vector_store %arg21[%c3_122, %c0_123, %c0_124], %210 {strides = array<i32>} : memref<4x8x128xbf16, #tpu.memory_space<vmem>>, vector<1x8x8xbf16>,
    } else {
    }
    %c8_i32 = arith.constant 8 : i32
    %3 = arith.muli %arg1, %c8_i32 : i32
    %4 = tpu.assume_multiple %3, 8 : i32
    %c0 = arith.constant 0 : index
    %5 = arith.index_cast %4 : i32 to index
    %c0_1 = arith.constant 0 : index
    %6 = vector.load %arg2[%c0, %5, %c0_1] : memref<1x8x32xf32, #tpu.memory_space<vmem>>, vector<1x8x32xf32>
    %7 = vector.shape_cast %6 : vector<1x8x32xf32> to vector<8x32xf32>
    %8 = arith.truncf %7 : vector<8x32xf32> to vector<8x32xbf16>
    %c0_2 = arith.constant 0 : index
    %c0_3 = arith.constant 0 : index
    %9 = vector.load %arg3[%c0_2, %c0_3] : memref<32x32xbf16, #tpu.memory_space<vmem>>, vector<32x32xbf16>
    %cst = arith.constant dense<0.000000e+00> : vector<8x32xf32>
    %10 = tpu.matmul %8, %9, %cst {dimension_numbers = #tpu.dot_dimension_numbers<[1], [0], [0], [1], [0, 0, 1, 1], [], []>} : vector<8x32xbf16>, vector<32x32xbf16>, vector<8x32xf32> -> vector<8x32xf32>
    %c0_4 = arith.constant 0 : index
    %c0_5 = arith.constant 0 : index
    %11 = vector.load %arg4[%c0_4, %c0_5] : memref<1x32xf32, #tpu.memory_space<vmem>>, vector<1x32xf32>
    %12 = vector.broadcast %11 : vector<1x32xf32> to vector<8x32xf32>
    %13 = arith.addf %10, %12 : vector<8x32xf32>
    %cst_6 = arith.constant 0.000000e+00 : bf16
    %14 = vector.broadcast %cst_6 : bf16 to vector<4x8x128xbf16>
    %c0_7 = arith.constant 0 : index
    %c0_8 = arith.constant 0 : index
    %c0_9 = arith.constant 0 : index
    %15 = vector.load %arg22[%c0_7, %c0_8, %c0_9] : memref<4x8x128xbf16, #tpu.memory_space<vmem>>, vector<4x8x128xbf16>
    tpu.vector_store %arg22[%c0_7, %c0_8, %c0_9], %14 {strides = array<i32>} : memref<4x8x128xbf16, #tpu.memory_space<vmem>>, vector<4x8x128xbf16>,
    %16 = vector.extract_strided_slice %13 {offsets = [0, 0], sizes = [8, 8], strides = [1, 1]} : vector<8x32xf32> to vector<8x8xf32>
    %17 = arith.truncf %16 : vector<8x8xf32> to vector<8x8xbf16>
    %c0_10 = arith.constant 0 : index
    %c0_11 = arith.constant 0 : index
    %c0_12 = arith.constant 0 : index
    %18 = vector.load %arg22[%c0_10, %c0_11, %c0_12] : memref<4x8x128xbf16, #tpu.memory_space<vmem>>, vector<1x8x8xbf16>
    %19 = vector.shape_cast %18 : vector<1x8x8xbf16> to vector<8x8xbf16>
    %20 = vector.shape_cast %17 : vector<8x8xbf16> to vector<1x8x8xbf16>
    tpu.vector_store %arg22[%c0_10, %c0_11, %c0_12], %20 {strides = array<i32>} : memref<4x8x128xbf16, #tpu.memory_space<vmem>>, vector<1x8x8xbf16>,
    %21 = vector.extract_strided_slice %13 {offsets = [0, 8], sizes = [8, 8], strides = [1, 1]} : vector<8x32xf32> to vector<8x8xf32>
    %22 = arith.truncf %21 : vector<8x8xf32> to vector<8x8xbf16>
    %c1 = arith.constant 1 : index
    %c0_13 = arith.constant 0 : index
    %c0_14 = arith.constant 0 : index
    %23 = vector.load %arg22[%c1, %c0_13, %c0_14] : memref<4x8x128xbf16, #tpu.memory_space<vmem>>, vector<1x8x8xbf16>
    %24 = vector.shape_cast %23 : vector<1x8x8xbf16> to vector<8x8xbf16>
    %25 = vector.shape_cast %22 : vector<8x8xbf16> to vector<1x8x8xbf16>
    tpu.vector_store %arg22[%c1, %c0_13, %c0_14], %25 {strides = array<i32>} : memref<4x8x128xbf16, #tpu.memory_space<vmem>>, vector<1x8x8xbf16>,
    %26 = vector.extract_strided_slice %13 {offsets = [0, 16], sizes = [8, 8], strides = [1, 1]} : vector<8x32xf32> to vector<8x8xf32>
    %27 = arith.truncf %26 : vector<8x8xf32> to vector<8x8xbf16>
    %c2 = arith.constant 2 : index
    %c0_15 = arith.constant 0 : index
    %c0_16 = arith.constant 0 : index
    %28 = vector.load %arg22[%c2, %c0_15, %c0_16] : memref<4x8x128xbf16, #tpu.memory_space<vmem>>, vector<1x8x8xbf16>
    %29 = vector.shape_cast %28 : vector<1x8x8xbf16> to vector<8x8xbf16>
    %30 = vector.shape_cast %27 : vector<8x8xbf16> to vector<1x8x8xbf16>
    tpu.vector_store %arg22[%c2, %c0_15, %c0_16], %30 {strides = array<i32>} : memref<4x8x128xbf16, #tpu.memory_space<vmem>>, vector<1x8x8xbf16>,
    %31 = vector.extract_strided_slice %13 {offsets = [0, 24], sizes = [8, 8], strides = [1, 1]} : vector<8x32xf32> to vector<8x8xf32>
    %32 = arith.truncf %31 : vector<8x8xf32> to vector<8x8xbf16>
    %c3 = arith.constant 3 : index
    %c0_17 = arith.constant 0 : index
    %c0_18 = arith.constant 0 : index
    %33 = vector.load %arg22[%c3, %c0_17, %c0_18] : memref<4x8x128xbf16, #tpu.memory_space<vmem>>, vector<1x8x8xbf16>
    %34 = vector.shape_cast %33 : vector<1x8x8xbf16> to vector<8x8xbf16>
    %35 = vector.shape_cast %32 : vector<8x8xbf16> to vector<1x8x8xbf16>
    tpu.vector_store %arg22[%c3, %c0_17, %c0_18], %35 {strides = array<i32>} : memref<4x8x128xbf16, #tpu.memory_space<vmem>>, vector<1x8x8xbf16>,
    %c0_19 = arith.constant 0 : index
    %c0_20 = arith.constant 0 : index
    %c0_21 = arith.constant 0 : index
    %36 = vector.load %arg22[%c0_19, %c0_20, %c0_21] : memref<4x8x128xbf16, #tpu.memory_space<vmem>>, vector<4x8x128xbf16>
    %cst_22 = arith.constant 0xFF800000 : f32
    %37 = vector.broadcast %cst_22 : f32 to vector<4x8x1xf32>
    %cst_23 = arith.constant 0.000000e+00 : f32
    %38 = vector.broadcast %cst_23 : f32 to vector<4x8x1xf32>
    %cst_24 = arith.constant 0.000000e+00 : f32
    %39 = vector.broadcast %cst_24 : f32 to vector<4x8x128xf32>
    %c0_25 = arith.constant 0 : index
    %c0_26 = arith.constant 0 : index
    %c0_27 = arith.constant 0 : index
    %40 = vector.load %arg20[%c0_25, %c0_26, %c0_27] : memref<4x8x128xbf16, #tpu.memory_space<vmem>>, vector<4x8x128xbf16>
    %c0_28 = arith.constant 0 : index
    %c0_29 = arith.constant 0 : index
    %c0_30 = arith.constant 0 : index
    %41 = vector.load %arg21[%c0_28, %c0_29, %c0_30] : memref<4x8x128xbf16, #tpu.memory_space<vmem>>, vector<4x8x128xbf16>
    "tpu.trace_start"() <{level = 10 : i32, message = "hqd,hkd->hqk"}> : () -> ()
    %cst_31 = arith.constant dense<0.000000e+00> : vector<4x8x8xf32>
    %42 = tpu.matmul %36, %40, %cst_31 {dimension_numbers = #tpu.dot_dimension_numbers<[2], [2], [1], [1], [0, 0, 0, 1, 1, 1], [0], [0]>} : vector<4x8x128xbf16>, vector<4x8x128xbf16>, vector<4x8x8xf32> -> vector<4x8x8xf32>
    "tpu.trace_stop"() : () -> ()
    %cst_32 = arith.constant 0.353553385 : f32
    %43 = vector.broadcast %cst_32 : f32 to vector<4x8x8xf32>
    %44 = arith.mulf %42, %43 : vector<4x8x8xf32>
    %cst_33 = arith.constant dense<0xFF800000> : vector<4x8xf32>
    %45 = vector.multi_reduction <maximumf>, %44, %cst_33 [2] : vector<4x8x8xf32> to vector<4x8xf32>
    %46 = vector.shape_cast %45 : vector<4x8xf32> to vector<4x8x1xf32>
    %47 = arith.maximumf %37, %46 : vector<4x8x1xf32>
    %48 = arith.subf %37, %47 : vector<4x8x1xf32>
    %49 = math.exp %48 : vector<4x8x1xf32>
    %50 = vector.broadcast %47 : vector<4x8x1xf32> to vector<4x8x8xf32>
    %51 = arith.subf %44, %50 : vector<4x8x8xf32>
    %52 = math.exp %51 : vector<4x8x8xf32>
    %53 = arith.mulf %49, %38 : vector<4x8x1xf32>
    %cst_34 = arith.constant dense<0.000000e+00> : vector<4x8xf32>
    %54 = vector.multi_reduction <add>, %52, %cst_34 [2] : vector<4x8x8xf32> to vector<4x8xf32>
    %55 = vector.shape_cast %54 : vector<4x8xf32> to vector<4x8x1xf32>
    %56 = arith.addf %53, %55 : vector<4x8x1xf32>
    %57 = vector.broadcast %49 : vector<4x8x1xf32> to vector<4x8x128xf32>
    %58 = arith.mulf %57, %39 : vector<4x8x128xf32>
    %59 = arith.truncf %52 : vector<4x8x8xf32> to vector<4x8x8xbf16>
    "tpu.trace_start"() <{level = 10 : i32, message = "hqk,hkd->hqd"}> : () -> ()
    %cst_35 = arith.constant dense<0.000000e+00> : vector<4x8x128xf32>
    %60 = tpu.matmul %59, %41, %cst_35 {dimension_numbers = #tpu.dot_dimension_numbers<[2], [1], [1], [2], [0, 0, 0, 1, 1, 2], [0], [0]>} : vector<4x8x8xbf16>, vector<4x8x128xbf16>, vector<4x8x128xf32> -> vector<4x8x128xf32>
    "tpu.trace_stop"() : () -> ()
    %61 = arith.addf %58, %60 : vector<4x8x128xf32>
    %62 = tpu.reciprocal %56 {approx = true} : vector<4x8x1xf32> -> vector<4x8x1xf32>
    %63 = vector.broadcast %62 : vector<4x8x1xf32> to vector<4x8x128xf32>
    %64 = arith.mulf %61, %63 : vector<4x8x128xf32>
    %65 = vector.extract_strided_slice %64 {offsets = [0, 0, 0], sizes = [1, 8, 8], strides = [1, 1, 1]} : vector<4x8x128xf32> to vector<1x8x8xf32>
    %66 = vector.shape_cast %65 : vector<1x8x8xf32> to vector<8x8xf32>
    %67 = arith.truncf %66 : vector<8x8xf32> to vector<8x8xbf16>
    %c0_36 = arith.constant 0 : index
    %c0_37 = arith.constant 0 : index
    %68 = vector.load %arg23[%c0_36, %c0_37] : memref<8x32xbf16, #tpu.memory_space<vmem>>, vector<8x8xbf16>
    tpu.vector_store %arg23[%c0_36, %c0_37], %67 {strides = array<i32>} : memref<8x32xbf16, #tpu.memory_space<vmem>>, vector<8x8xbf16>,
    %69 = vector.extract_strided_slice %64 {offsets = [1, 0, 0], sizes = [1, 8, 8], strides = [1, 1, 1]} : vector<4x8x128xf32> to vector<1x8x8xf32>
    %70 = vector.shape_cast %69 : vector<1x8x8xf32> to vector<8x8xf32>
    %71 = arith.truncf %70 : vector<8x8xf32> to vector<8x8xbf16>
    %c0_38 = arith.constant 0 : index
    %c8 = arith.constant 8 : index
    %72 = vector.load %arg23[%c0_38, %c8] : memref<8x32xbf16, #tpu.memory_space<vmem>>, vector<8x8xbf16>
    tpu.vector_store %arg23[%c0_38, %c8], %71 {strides = array<i32>} : memref<8x32xbf16, #tpu.memory_space<vmem>>, vector<8x8xbf16>,
    %73 = vector.extract_strided_slice %64 {offsets = [2, 0, 0], sizes = [1, 8, 8], strides = [1, 1, 1]} : vector<4x8x128xf32> to vector<1x8x8xf32>
    %74 = vector.shape_cast %73 : vector<1x8x8xf32> to vector<8x8xf32>
    %75 = arith.truncf %74 : vector<8x8xf32> to vector<8x8xbf16>
    %c0_39 = arith.constant 0 : index
    %c16 = arith.constant 16 : index
    %76 = vector.load %arg23[%c0_39, %c16] : memref<8x32xbf16, #tpu.memory_space<vmem>>, vector<8x8xbf16>
    tpu.vector_store %arg23[%c0_39, %c16], %75 {strides = array<i32>} : memref<8x32xbf16, #tpu.memory_space<vmem>>, vector<8x8xbf16>,
    %77 = vector.extract_strided_slice %64 {offsets = [3, 0, 0], sizes = [1, 8, 8], strides = [1, 1, 1]} : vector<4x8x128xf32> to vector<1x8x8xf32>
    %78 = vector.shape_cast %77 : vector<1x8x8xf32> to vector<8x8xf32>
    %79 = arith.truncf %78 : vector<8x8xf32> to vector<8x8xbf16>
    %c0_40 = arith.constant 0 : index
    %c24 = arith.constant 24 : index
    %80 = vector.load %arg23[%c0_40, %c24] : memref<8x32xbf16, #tpu.memory_space<vmem>>, vector<8x8xbf16>
    tpu.vector_store %arg23[%c0_40, %c24], %79 {strides = array<i32>} : memref<8x32xbf16, #tpu.memory_space<vmem>>, vector<8x8xbf16>,
    %c0_41 = arith.constant 0 : index
    %c0_42 = arith.constant 0 : index
    %81 = vector.load %arg23[%c0_41, %c0_42] : memref<8x32xbf16, #tpu.memory_space<vmem>>, vector<8x32xbf16>
    %c0_43 = arith.constant 0 : index
    %c0_44 = arith.constant 0 : index
    %82 = vector.load %arg9[%c0_43, %c0_44] : memref<32x32xbf16, #tpu.memory_space<vmem>>, vector<32x32xbf16>
    %cst_45 = arith.constant dense<0.000000e+00> : vector<8x32xf32>
    %83 = tpu.matmul %81, %82, %cst_45 {dimension_numbers = #tpu.dot_dimension_numbers<[1], [0], [0], [1], [0, 0, 1, 1], [], []>} : vector<8x32xbf16>, vector<32x32xbf16>, vector<8x32xf32> -> vector<8x32xf32>
    %c0_46 = arith.constant 0 : index
    %c0_47 = arith.constant 0 : index
    %84 = vector.load %arg10[%c0_46, %c0_47] : memref<1x32xf32, #tpu.memory_space<vmem>>, vector<1x32xf32>
    %85 = vector.broadcast %84 : vector<1x32xf32> to vector<8x32xf32>
    %86 = arith.addf %83, %85 : vector<8x32xf32>
    %87 = arith.addf %7, %86 : vector<8x32xf32>
    %c0_48 = arith.constant 0 : index
    %c0_49 = arith.constant 0 : index
    %88 = vector.load %arg11[%c0_48, %c0_49] : memref<1x32xf32, #tpu.memory_space<vmem>>, vector<1x32xf32>
    %c0_50 = arith.constant 0 : index
    %c0_51 = arith.constant 0 : index
    %89 = vector.load %arg12[%c0_50, %c0_51] : memref<1x32xf32, #tpu.memory_space<vmem>>, vector<1x32xf32>
    %cst_52 = arith.constant dense<0.000000e+00> : vector<8xf32>
    %90 = vector.multi_reduction <add>, %87, %cst_52 [1] : vector<8x32xf32> to vector<8xf32>
    %91 = vector.shape_cast %90 : vector<8xf32> to vector<8x1xf32>
    %cst_53 = arith.constant 3.200000e+01 : f32
    %92 = vector.broadcast %cst_53 : f32 to vector<8x1xf32>
    %93 = arith.divf %91, %92 : vector<8x1xf32>
    %94 = vector.broadcast %93 : vector<8x1xf32> to vector<8x32xf32>
    %95 = arith.subf %87, %94 : vector<8x32xf32>
    %96 = arith.mulf %95, %95 : vector<8x32xf32>
    %cst_54 = arith.constant dense<0.000000e+00> : vector<8xf32>
    %97 = vector.multi_reduction <add>, %96, %cst_54 [1] : vector<8x32xf32> to vector<8xf32>
    %98 = vector.shape_cast %97 : vector<8xf32> to vector<8x1xf32>
    %cst_55 = arith.constant 3.200000e+01 : f32
    %99 = vector.broadcast %cst_55 : f32 to vector<8x1xf32>
    %100 = arith.divf %98, %99 : vector<8x1xf32>
    %cst_56 = arith.constant 9.99999974E-6 : f32
    %101 = vector.broadcast %cst_56 : f32 to vector<8x1xf32>
    %102 = arith.addf %100, %101 : vector<8x1xf32>
    %103 = math.rsqrt %102 : vector<8x1xf32>
    %104 = vector.broadcast %93 : vector<8x1xf32> to vector<8x32xf32>
    %105 = arith.subf %87, %104 : vector<8x32xf32>
    %106 = vector.broadcast %103 : vector<8x1xf32> to vector<8x32xf32>
    %107 = arith.mulf %105, %106 : vector<8x32xf32>
    %108 = vector.broadcast %88 : vector<1x32xf32> to vector<8x32xf32>
    %109 = arith.mulf %107, %108 : vector<8x32xf32>
    %110 = vector.broadcast %89 : vector<1x32xf32> to vector<8x32xf32>
    %111 = arith.addf %109, %110 : vector<8x32xf32>
    %112 = arith.truncf %111 : vector<8x32xf32> to vector<8x32xbf16>
    %c0_57 = arith.constant 0 : index
    %c0_58 = arith.constant 0 : index
    %113 = vector.load %arg13[%c0_57, %c0_58] : memref<32x64xbf16, #tpu.memory_space<vmem>>, vector<32x64xbf16>
    %cst_59 = arith.constant dense<0.000000e+00> : vector<8x64xf32>
    %114 = tpu.matmul %112, %113, %cst_59 {dimension_numbers = #tpu.dot_dimension_numbers<[1], [0], [0], [1], [0, 0, 1, 1], [], []>} : vector<8x32xbf16>, vector<32x64xbf16>, vector<8x64xf32> -> vector<8x64xf32>
    %c0_60 = arith.constant 0 : index
    %c0_61 = arith.constant 0 : index
    %115 = vector.load %arg14[%c0_60, %c0_61] : memref<1x64xf32, #tpu.memory_space<vmem>>, vector<1x64xf32>
    %116 = vector.broadcast %115 : vector<1x64xf32> to vector<8x64xf32>
    %117 = arith.addf %114, %116 : vector<8x64xf32>
    %cst_62 = arith.constant 0.000000e+00 : f32
    %118 = vector.broadcast %cst_62 : f32 to vector<8x64xf32>
    %119 = arith.maximumf %117, %118 : vector<8x64xf32>
    %120 = arith.truncf %119 : vector<8x64xf32> to vector<8x64xbf16>
    %c0_63 = arith.constant 0 : index
    %c0_64 = arith.constant 0 : index
    %121 = vector.load %arg15[%c0_63, %c0_64] : memref<64x32xbf16, #tpu.memory_space<vmem>>, vector<64x32xbf16>
    %cst_65 = arith.constant dense<0.000000e+00> : vector<8x32xf32>
    %122 = tpu.matmul %120, %121, %cst_65 {dimension_numbers = #tpu.dot_dimension_numbers<[1], [0], [0], [1], [0, 0, 1, 1], [], []>} : vector<8x64xbf16>, vector<64x32xbf16>, vector<8x32xf32> -> vector<8x32xf32>
    %c0_66 = arith.constant 0 : index
    %c0_67 = arith.constant 0 : index
    %123 = vector.load %arg16[%c0_66, %c0_67] : memref<1x32xf32, #tpu.memory_space<vmem>>, vector<1x32xf32>
    %124 = vector.broadcast %123 : vector<1x32xf32> to vector<8x32xf32>
    %125 = arith.addf %122, %124 : vector<8x32xf32>
    %126 = arith.addf %111, %125 : vector<8x32xf32>
    %c0_68 = arith.constant 0 : index
    %c0_69 = arith.constant 0 : index
    %127 = vector.load %arg17[%c0_68, %c0_69] : memref<1x32xf32, #tpu.memory_space<vmem>>, vector<1x32xf32>
    %c0_70 = arith.constant 0 : index
    %c0_71 = arith.constant 0 : index
    %128 = vector.load %arg18[%c0_70, %c0_71] : memref<1x32xf32, #tpu.memory_space<vmem>>, vector<1x32xf32>
    %cst_72 = arith.constant dense<0.000000e+00> : vector<8xf32>
    %129 = vector.multi_reduction <add>, %126, %cst_72 [1] : vector<8x32xf32> to vector<8xf32>
    %130 = vector.shape_cast %129 : vector<8xf32> to vector<8x1xf32>
    %cst_73 = arith.constant 3.200000e+01 : f32
    %131 = vector.broadcast %cst_73 : f32 to vector<8x1xf32>
    %132 = arith.divf %130, %131 : vector<8x1xf32>
    %133 = vector.broadcast %132 : vector<8x1xf32> to vector<8x32xf32>
    %134 = arith.subf %126, %133 : vector<8x32xf32>
    %135 = arith.mulf %134, %134 : vector<8x32xf32>
    %cst_74 = arith.constant dense<0.000000e+00> : vector<8xf32>
    %136 = vector.multi_reduction <add>, %135, %cst_74 [1] : vector<8x32xf32> to vector<8xf32>
    %137 = vector.shape_cast %136 : vector<8xf32> to vector<8x1xf32>
    %cst_75 = arith.constant 3.200000e+01 : f32
    %138 = vector.broadcast %cst_75 : f32 to vector<8x1xf32>
    %139 = arith.divf %137, %138 : vector<8x1xf32>
    %cst_76 = arith.constant 9.99999974E-6 : f32
    %140 = vector.broadcast %cst_76 : f32 to vector<8x1xf32>
    %141 = arith.addf %139, %140 : vector<8x1xf32>
    %142 = math.rsqrt %141 : vector<8x1xf32>
    %143 = vector.broadcast %132 : vector<8x1xf32> to vector<8x32xf32>
    %144 = arith.subf %126, %143 : vector<8x32xf32>
    %145 = vector.broadcast %142 : vector<8x1xf32> to vector<8x32xf32>
    %146 = arith.mulf %144, %145 : vector<8x32xf32>
    %147 = vector.broadcast %127 : vector<1x32xf32> to vector<8x32xf32>
    %148 = arith.mulf %146, %147 : vector<8x32xf32>
    %149 = vector.broadcast %128 : vector<1x32xf32> to vector<8x32xf32>
    %150 = arith.addf %148, %149 : vector<8x32xf32>
    %c0_77 = arith.constant 0 : index
    %c0_78 = arith.constant 0 : index
    %c0_79 = arith.constant 0 : index
    %151 = vector.load %arg19[%c0_77, %c0_78, %c0_79] : memref<1x8x32xf32, #tpu.memory_space<vmem>>, vector<1x8x32xf32>
    %152 = vector.shape_cast %151 : vector<1x8x32xf32> to vector<8x32xf32>
    %153 = vector.shape_cast %150 : vector<8x32xf32> to vector<1x8x32xf32>
    tpu.vector_store %arg19[%c0_77, %c0_78, %c0_79], %153 {strides = array<i32>} : memref<1x8x32xf32, #tpu.memory_space<vmem>>, vector<1x8x32xf32>,
    return
  }
  func.func @transform_0(%arg0: i32, %arg1: i32) -> (i32, i32, i32) {
    %c0_i32 = arith.constant 0 : i32
    %c0_i32_0 = arith.constant 0 : i32
    %c0_i32_1 = arith.constant 0 : i32
    return %arg0, %c0_i32, %c0_i32_0 : i32, i32, i32
  }
  func.func @transform_1(%arg0: i32, %arg1: i32) -> (i32, i32) {
    %c0_i32 = arith.constant 0 : i32
    %c0_i32_0 = arith.constant 0 : i32
    %c0_i32_1 = arith.constant 0 : i32
    return %c0_i32, %c0_i32_0 : i32, i32
  }
  func.func @transform_2(%arg0: i32, %arg1: i32) -> (i32, i32) {
    %c0_i32 = arith.constant 0 : i32
    %c0_i32_0 = arith.constant 0 : i32
    %c0_i32_1 = arith.constant 0 : i32
    return %c0_i32, %c0_i32_0 : i32, i32
  }
  func.func @transform_3(%arg0: i32, %arg1: i32) -> (i32, i32) {
    %c0_i32 = arith.constant 0 : i32
    %c0_i32_0 = arith.constant 0 : i32
    %c0_i32_1 = arith.constant 0 : i32
    return %c0_i32, %c0_i32_0 : i32, i32
  }
  func.func @transform_4(%arg0: i32, %arg1: i32) -> (i32, i32) {
    %c0_i32 = arith.constant 0 : i32
    %c0_i32_0 = arith.constant 0 : i32
    %c0_i32_1 = arith.constant 0 : i32
    return %c0_i32, %c0_i32_0 : i32, i32
  }
  func.func @transform_5(%arg0: i32, %arg1: i32) -> (i32, i32) {
    %c0_i32 = arith.constant 0 : i32
    %c0_i32_0 = arith.constant 0 : i32
    %c0_i32_1 = arith.constant 0 : i32
    return %c0_i32, %c0_i32_0 : i32, i32
  }
  func.func @transform_6(%arg0: i32, %arg1: i32) -> (i32, i32) {
    %c0_i32 = arith.constant 0 : i32
    %c0_i32_0 = arith.constant 0 : i32
    %c0_i32_1 = arith.constant 0 : i32
    return %c0_i32, %c0_i32_0 : i32, i32
  }
  func.func @transform_7(%arg0: i32, %arg1: i32) -> (i32, i32) {
    %c0_i32 = arith.constant 0 : i32
    %c0_i32_0 = arith.constant 0 : i32
    %c0_i32_1 = arith.constant 0 : i32
    return %c0_i32, %c0_i32_0 : i32, i32
  }
  func.func @transform_8(%arg0: i32, %arg1: i32) -> (i32, i32) {
    %c0_i32 = arith.constant 0 : i32
    %c0_i32_0 = arith.constant 0 : i32
    %c0_i32_1 = arith.constant 0 : i32
    return %c0_i32, %c0_i32_0 : i32, i32
  }
  func.func @transform_9(%arg0: i32, %arg1: i32) -> (i32, i32) {
    %c0_i32 = arith.constant 0 : i32
    %c0_i32_0 = arith.constant 0 : i32
    %c0_i32_1 = arith.constant 0 : i32
    return %c0_i32, %c0_i32_0 : i32, i32
  }
  func.func @transform_10(%arg0: i32, %arg1: i32) -> (i32, i32) {
    %c0_i32 = arith.constant 0 : i32
    %c0_i32_0 = arith.constant 0 : i32
    %c0_i32_1 = arith.constant 0 : i32
    return %c0_i32, %c0_i32_0 : i32, i32
  }
  func.func @transform_11(%arg0: i32, %arg1: i32) -> (i32, i32) {
    %c0_i32 = arith.constant 0 : i32
    %c0_i32_0 = arith.constant 0 : i32
    %c0_i32_1 = arith.constant 0 : i32
    return %c0_i32, %c0_i32_0 : i32, i32
  }
  func.func @transform_12(%arg0: i32, %arg1: i32) -> (i32, i32) {
    %c0_i32 = arith.constant 0 : i32
    %c0_i32_0 = arith.constant 0 : i32
    %c0_i32_1 = arith.constant 0 : i32
    return %c0_i32, %c0_i32_0 : i32, i32
  }
  func.func @transform_13(%arg0: i32, %arg1: i32) -> (i32, i32) {
    %c0_i32 = arith.constant 0 : i32
    %c0_i32_0 = arith.constant 0 : i32
    %c0_i32_1 = arith.constant 0 : i32
    return %c0_i32, %c0_i32_0 : i32, i32
  }
  func.func @transform_14(%arg0: i32, %arg1: i32) -> (i32, i32) {
    %c0_i32 = arith.constant 0 : i32
    %c0_i32_0 = arith.constant 0 : i32
    %c0_i32_1 = arith.constant 0 : i32
    return %c0_i32, %c0_i32_0 : i32, i32
  }
  func.func @transform_15(%arg0: i32, %arg1: i32) -> (i32, i32) {
    %c0_i32 = arith.constant 0 : i32
    %c0_i32_0 = arith.constant 0 : i32
    %c0_i32_1 = arith.constant 0 : i32
    return %c0_i32, %c0_i32_0 : i32, i32
  }
  func.func @transform_16(%arg0: i32, %arg1: i32) -> (i32, i32) {
    %c0_i32 = arith.constant 0 : i32
    %c0_i32_0 = arith.constant 0 : i32
    %c0_i32_1 = arith.constant 0 : i32
    return %c0_i32, %c0_i32_0 : i32, i32
  }
  func.func @transform_17(%arg0: i32, %arg1: i32) -> (i32, i32, i32) {
    %c0_i32 = arith.constant 0 : i32
    %c0_i32_0 = arith.constant 0 : i32
    return %arg0, %arg1, %c0_i32 : i32, i32, i32
  }
}

</mosaic_0001>

<bundles_post_ra>
// kernel: tpu_custom_call.1
= control target key start
LH: loop header
LB: loop body
LE: loop exit
PB: predicated region body
PF: predicated region fallthrough
CT: control target
= control target key end

     0   :  { %s2665_s0 = inlined_call_operand.vmem [shape: f32[2,8,32], index: 0, kind: input, shape index: {}]   ;;  %s2666_s1 = inlined_call_operand.vmem [shape: bf16[32,32], index: 1, kind: input, shape index: {}]   ;;  %s2667_s2 = inlined_call_operand.vmem [shape: f32[1,32], index: 2, kind: input, shape index: {}]   ;;  %s2668_s3 = inlined_call_operand.vmem [shape: bf16[32,32], index: 3, kind: input, shape index: {}]   ;;  %s2669_s4 = inlined_call_operand.vmem [shape: f32[1,32], index: 4, kind: input, shape index: {}]   ;;  %s2670_s5 = inlined_call_operand.hbm [shape: bf16[32,32], index: 5, kind: input, shape index: {}]   ;;  %s2671_s6 = inlined_call_operand.vmem [shape: f32[1,32], index: 6, kind: input, shape index: {}]   ;;  %s2672_s7 = inlined_call_operand.hbm [shape: bf16[32,32], index: 7, kind: input, shape index: {}]   ;;  %s2673_s8 = inlined_call_operand.vmem [shape: f32[1,32], index: 8, kind: input, shape index: {}]   ;;  %s2674_s9 = inlined_call_operand.vmem [shape: f32[1,32], index: 9, kind: input, shape index: {}]   ;;  %s2675_s10 = inlined_call_operand.vmem [shape: f32[1,32], index: 10, kind: input, shape index: {}]   ;;  %s2676_s11 = inlined_call_operand.hbm [shape: bf16[32,64], index: 11, kind: input, shape index: {}]   ;;  %s2677_s12 = inlined_call_operand.vmem [shape: f32[1,64], index: 12, kind: input, shape index: {}]   ;;  %s2678_s13 = inlined_call_operand.vmem [shape: bf16[64,32], index: 13, kind: input, shape index: {}]   ;;  %s2679_s14 = inlined_call_operand.vmem [shape: f32[1,32], index: 14, kind: input, shape index: {}]   ;;  %s2680_s15 = inlined_call_operand.vmem [shape: f32[1,32], index: 15, kind: input, shape index: {}]   ;;  %s2681_s16 = inlined_call_operand.vmem [shape: f32[1,32], index: 16, kind: input, shape index: {}]   ;;  %s2682_s17 = inlined_call_operand.hbm [shape: f32[2,8,32], index: 17, kind: output, shape index: {}]  }
   0x1   :  { %2691 = sst [smem:[#allocation23_spill]] %s2665_s0 }
   0x2   :  { %2692 = sst [smem:[#allocation24_spill]] %s2666_s1 }
   0x3   :  { %2693 = sst [smem:[#allocation25_spill]] %s2667_s2 }
   0x4   :  { %2694 = sst [smem:[#allocation26_spill]] %s2670_s5 }
   0x5   :  { %22 = vsyncpa [#allocation7], 0 }
   0x6   :  { %23 = vsyncpa [#allocation10], 0 }
   0x7   :  { %24 = vsyncpa [#allocation8], 0 }
   0x8   :  { %26 = vsyncpa [#allocation8 + $0x1], 0  ;;  %s2351_s24 = smov 0   ;;  %s2353_s25 = smov 0  }
   0x9   :  { %s2355_s26 = smov 0   ;;  %s2357_s27 = smov 0  }
   0xa   :  { %s2359_s28 = smov 0   ;;  %s2361_s29 = smov 0  }
   0xb LB: > { %2695 = sst [smem:[#allocation16_spill]] %s2224_s24  ;;  %s1744_s0 = sadd.s32 4294967295, %s2244_s29   ;;  %s2244_s29 = sphi %s2361_s29, %s32_s29   ;;  %s2240_s28 = sphi %s2359_s28, %s2719_s28   ;;  %s2236_s27 = sphi %s2357_s27, %s2718_s27   ;;  %s2232_s26 = sphi %s2355_s26, %s2717_s26   ;;  %s2228_s25 = sphi %s2353_s25, %s2721_s25   ;;  %s2224_s24 = sphi %s2351_s24, %s2720_s24  }
   0xc   : > { %2696 = sst [smem:[#allocation17_spill]] %s2232_s26  ;;  %s1745_s30 = sadd.s32 4294967294, %s2244_s29  }
   0xd   : > { %2697 = sst [smem:[#allocation18_spill]] %s2240_s28  ;;  %s44_s18 = sadd.s32 1, %s2240_s28 }
   0xe   : > { %2698 = sst [smem:[#allocation19_spill]] %s2244_s29  ;;  %s415_s19 = sadd.s32 1, %s2232_s26 }
   0xf   : > { %p46_p0 = scmp.ge.s32.totalorder %s44_s18, 2  ;;  %p425_p1 = scmp.ne.s32.totalorder %s2232_s26, %s2228_s25 }
  0x10   : > { %p426_p2 = scmp.eq.s32.totalorder %s1744_s0, 1  ;;  %p431_p3 = scmp.ne.s32.totalorder %s2228_s25, %s2224_s24 }
  0x11   : > { %s2723_s18 = smov (%p46_p0, %s44_s18), 0  ;;  %p432_p5 = scmp.eq.s32.totalorder %s1745_s30, 1 }
  0x12   : > { %2699 = sst [smem:[#allocation20_spill]] %s2723_s18  ;;  %p2391_p4 = por %p426_p2, %p425_p1 }
  0x13   : > { %s410_s20 = ssub.s32 %s2240_s28, %s2723_s18  ;;  %p1746_p6 = scmp.ge.s32.totalorder %s2244_s29, 1 }
  0x14   : > { %p413_p7 = scmp.eq.s32.totalorder %s410_s20, 0  ;;  %p2398_p8 = por %p432_p5, %p431_p3 }
  0x15   : > { %p439_p9 = scmp.lt.s32.totalorder %s2244_s29, 3  ;;  %p2410_p11 = scmp.eq.s32.totalorder %s1744_s0, 0 }
  0x16   : > { %s2701_s21 = scalar_select %p2398_p8, 1, 0 }
  0x17   : > { %s2404_s22 = scalar_select %p413_p7, %s2232_s26, %s415_s19  }
  0x18   : > { %2702 = sst [smem:[#allocation21_spill]] %s2701_s21  ;;  %p2406_p10 = pnand %p1746_p6, %p439_p9 }
  0x19   : > { %2703 = sst [smem:[#allocation22_spill]] %s2404_s22  ;;  %s2246_s30 = smov [#allocation9]  }
  0x1a   : > { %p1957_p12 = pneg %p2406_p10  ;;  %s479_s20 = sshll.u32 %s2246_s30, 4  ;;  %s480_s20 = int_to_ptr.vmem [resolvable:$true] %s479_s20 }
  0x1b   : > { %s2247_s19 = smov [#allocation6]   ;;  %s2093_s0 = scalar_lea.vmem %s480_s20, 256 }
  0x1c   : > { %p2418_p13 = pnand %p2410_p11, %p1957_p12  ;;  %s463_s28 = sshll.u32 %s2247_s19, 4  ;;  %s464_s28 = int_to_ptr.vmem [resolvable:$true] %s463_s28 }
  0x1d   : > { %p2094_p1 = scmp.ne.s32.totalorder %s480_s20, %s2093_s0  ;;  %p2101_p5 = scmp.lt.s32.totalorder %s480_s20, %s480_s20 }
  0x1e   : > { %p2084_p0 = pneg %p2418_p13  ;;  %p2102_p6 = scmp.lt.s32.totalorder %s2093_s0, %s2093_s0 }
  0x20   : > { %p2096_p2 = pnand %p2094_p1, %p2084_p0  ;;  %p2103_p7 = por %p2102_p6, %p2101_p5 }
  0x22   : > { %p2097_p3 = pneg %p2096_p2 }
  0x24   : > { %p2104_p9 = pnand %p2103_p7, %p2097_p3 }
  0x26   : > { %2107 = shalt.err (!%p2104_p9)
}
  0x27   : > { %s2248_s30 = smov 64   ;;  %s2249_s22 = smov 4  }
  0x28   : > { %1963 = dma.hbm_to_vmem [thread:$0]  (!%p2418_p13), %s2672_s7, 256, %s480_s20, [#allocation10], %s2248_s30, %s2248_s30, %s2249_s22  }
  0x29   : > { %s2119_s21 = scalar_lea.vmem %s464_s28, 256  ;;  %p2127_p8 = scmp.lt.s32.totalorder %s464_s28, %s464_s28 }
  0x2a   : > { %p2120_p12 = scmp.ne.s32.totalorder %s464_s28, %s2119_s21  ;;  %p2128_p5 = scmp.lt.s32.totalorder %s2119_s21, %s2119_s21 }
  0x2c   : > { %p2122_p1 = pnand %p2120_p12, %p2084_p0  ;;  %p2129_p3 = por %p2128_p5, %p2127_p8 }
  0x2e   : > { %p2123_p2 = pneg %p2122_p1 }
  0x30   : > { %p2130_p6 = pnand %p2129_p3, %p2123_p2 }
  0x32   : > { %2133 = shalt.err (!%p2130_p6)
}
  0x33   : > { %s2707_s5 = sld [smem:[#allocation26_spill]]  ;;  %s2250_s26 = smov [#allocation11]  }
  0x34   : > { %s501_s20 = sshll.u32 %s2250_s26, 4  ;;  %s502_s20 = int_to_ptr.vmem [resolvable:$true] %s501_s20 }
  0x35   : > { %s2145_s19 = scalar_lea.vmem %s502_s20, 256  ;;  %p2153_p1 = scmp.lt.s32.totalorder %s502_s20, %s502_s20 }
  0x36   : > { %p2146_p7 = scmp.ne.s32.totalorder %s502_s20, %s2145_s19  ;;  %p2154_p8 = scmp.lt.s32.totalorder %s2145_s19, %s2145_s19 }
  0x38   : > { %p2148_p9 = pnand %p2146_p7, %p2084_p0  ;;  %p2155_p2 = por %p2154_p8, %p2153_p1 }
  0x39   : > { %1960 = dma.hbm_to_vmem [thread:$0]  (!%p2418_p13), %s2707_s5, 256, %s464_s28, [#allocation7], %s2248_s30, %s2248_s30, %s2249_s22  }
  0x3a   : > { %p2149_p12 = pneg %p2148_p9 }
  0x3c   : > { %p2156_p5 = pnand %p2155_p2, %p2149_p12 }
  0x3e   : > { %2159 = shalt.err (!%p2156_p5)
}
  0x3f   : > { %1966 = dma.hbm_to_vmem [thread:$0]  (!%p2418_p13), %s2676_s11, 256, %s502_s20, [#allocation10], %s2248_s30, %s2248_s30, %s2249_s22  }
  0x40   : > { %539 = sbr.rel (%p2406_p10) target bundleno = 2322 (0x912), region = 88 }
  0x45   : > { %2211 = dma.done.wait (%p2410_p11), [#allocation7], 256  }
  0x46   : > { %2213 = vsyncadd (%p2410_p11), [#allocation7], 4294967040 }
  0x47   : > { %2215 = dma.done.wait (%p2410_p11), [#allocation10], 512  }
  0x48   : > { %2217 = vsyncadd (%p2410_p11), [#allocation10], 4294966784  ;;  %p598_p0 = scmp.lt.s32.totalorder %s2236_s27, 1  ;;  %v2251_v0 = vmov 0.0   ;;  %vm2252_vm0 = vmmov 0   ;;  %v2253_v1 = vmov 0  }
  0x49   : > { %1843 = vmatprep.subr.bf16.mxu0 %v2251_v0  ;;  %1847 = vmatprep.mubr.msk.bf16.mxu0 %vm2252_vm0, %v2251_v0  ;;  %607 = vst [vmem:[#allocation2] sm:$0xf] %v2253_v1  ;;  %608 = vst [vmem:[#allocation2 + $0x4] sm:$0xf] %v2253_v1  ;;  %s2708_s23 = sld [smem:[#allocation23_spill]]  ;;  %v2040_v2 = vld [vmem:[%s2668_s3 + $0x8] sm:$0xff]  }
  0x4a   : > { %s599_s28 = scalar_select %p598_p0, %s2236_s27, 1  ;;  %609 = vst [vmem:[#allocation2 + $0x8] sm:$0xf] %v2253_v1  ;;  %610 = vst [vmem:[#allocation2 + $0xc] sm:$0xf] %v2253_v1  ;;  %1851 = vmatprep.subr.bf16.mxu1 %v2251_v0  ;;  %1855 = vmatprep.mubr.msk.bf16.mxu1 %vm2252_vm0, %v2251_v0  ;;  %v2041_v3 = vld [vmem:[%s2668_s3] sm:$0xff]  }
  0x4b   : > { %611 = vst [vmem:[#allocation3] sm:$0xf] %v2253_v1  ;;  %612 = vst [vmem:[#allocation3 + $0x4] sm:$0xf] %v2253_v1  ;;  %1844 = vmatpush3.bf16.msra.mxu0 %v2040_v2  ;;  %vm640_vm1 = vcmask 261120   ;;  %v2044_v8 = vld [vmem:[#allocation6 + $0x8] sm:$0xff]  }
  0x4c   : > { %613 = vst [vmem:[#allocation3 + $0x8] sm:$0xf] %v2253_v1  ;;  %614 = vst [vmem:[#allocation3 + $0xc] sm:$0xf] %v2253_v1  ;;  %s1756_s24 = sshll.u32 %s599_s28, 3  ;;  %1845 = vmatprep.subr.bf16.mxu0 %v2251_v0  ;;  %s2709_s28 = sld [smem:[#allocation24_spill]]  ;;  %1852 = vmatpush3.bf16.msra.mxu1 %v2044_v8 }
  0x4d   : > { %859 = vst [vmem:[#allocation4] sm:$0xf] %v2253_v1  ;;  %860 = vst [vmem:[#allocation4 + $0x4] sm:$0xf] %v2253_v1  ;;  %1853 = vmatprep.subr.bf16.mxu1 %v2251_v0  ;;  %v2045_v9 = vld [vmem:[#allocation6] sm:$0xff]   ;;  %vm748_vm2 = vcmask 60416  }
  0x4e   : > { %861 = vst [vmem:[#allocation4 + $0x8] sm:$0xf] %v2253_v1  ;;  %862 = vst [vmem:[#allocation4 + $0xc] sm:$0xf] %v2253_v1  ;;  %v1757_v10 = vld [vmem:[%s2669_s4] ss:$0 sm:$0xff] }
  0x4f   : > { %s601_s30 = scalar_lea.vmem %s2708_s23, %s1756_s24  ;;  %1846 = vmatpush3.bf16.msra.mxu0 %v2041_v3  ;;  %s2711_s2 = sld [smem:[#allocation25_spill]]  ;;  %v1761_v26 = vld [vmem:[%s2671_s6] ss:$0 sm:$0xff]  ;;  %vm1124_vm3 = vcmask 1043456   ;;  %vm1060_vm4 = vcmask 64512   ;;  %vm1327_vm5 = vcmask 126016  }
  0x50   : > { %v2475_v4 = vld [vmem:[%s601_s30] sm:$0xff]  ;;  %1859 = vmatprep.subr.bf16.mxu0 %v2251_v0  ;;  %1854 = vmatpush3.bf16.msra.mxu1 %v2045_v9  ;;  %s2254_s30 = smov 120   ;;  %s2255_s20 = smov 112   ;;  %vm1336_vm6 = vcmask 191616   ;;  %vm1345_vm7 = vcmask 257216   ;;  %vm1553_vm8 = vcmask 523264  }
  0x51   : > { %v616_v6 = vpack.c.bf16 %v2475_v4, %v2475_v4  ;;  %1867 = vmatprep.subr.bf16.mxu1 %v2251_v0  ;;  %s2256_s19 = smov 104   ;;  %s2258_s24 = smov 16  }
  0x52   : > { %s2710_s5 = smov %s2709_s28  ;;  %v2042_v5 = vld [vmem:[%s2709_s28 + $0x8] sm:$0xff]   ;;  %s2257_s28 = smov 8  }
  0x53   : > { %v2043_v7 = vld [vmem:[%s2710_s5] sm:$0xff]   ;;  %1848 = vmatmul.mubr.msk.bf16.vlgmr.msra.gmra.mxu0 %vm640_vm1, %v616_v6  ;;  %1856 = vmatmul.mubr.msk.bf16.vlgmr.msra.gmra.mxu1 %vm640_vm1, %v616_v6  ;;  %s2259_s18 = smov 24   ;;  %s1798_s22 = sshll.u32 %s2236_s27, 7 }
  0x54   : > { %1860 = vmatpush3.bf16.msra.mxu0 %v2042_v5  ;;  %1863 = vmatprep.mubr.msk.bf16.mxu0 %vm2252_vm0, %v2251_v0 }
  0x55   : > { %1861 = vmatprep.subr.bf16.mxu0 %v2251_v0  ;;  %1869 = vmatprep.mubr.msk.bf16.mxu1 %vm2252_vm0, %v2251_v0  ;;  %v1767_v17 = vld [vmem:[%s2711_s2] ss:$0 sm:$0xff] }
  0x58   : > { %1862 = vmatpush3.bf16.msra.mxu0 %v2043_v7 }
  0x59   : > { %1873 = vmatprep.subr.bf16.mxu0 %v2251_v0 }
  0x5b   : > { %1864 = vmatmul.mubr.msk.bf16.vlgmr.msra.gmra.mxu0 %vm640_vm1, %v616_v6 }
  0x5c   : > { %1875 = vmatprep.mubr.msk.bf16.mxu0 %vm2252_vm0, %v2251_v0 }
 0x113   : > { %v678_v11 = vpop.f32.mrf.mxu0  ;;  %v741_v27 = vpop.f32.mrf.mxu1 }
 0x114   : > { %v679_v12 = vadd.f32 %v1757_v10, %v678_v11  ;;  %v742_v28 = vadd.f32 %v1761_v26, %v741_v27 }
 0x115   : > { %v1849_v13 = vpop.f32.mrf.mxu0  ;;  %v1857_v29 = vpop.f32.mrf.mxu1 }
 0x116   : > { %v747_v14 = vpack.c.bf16 %v679_v12, %v679_v12  ;;  %v2520_v30 = vpack.c.bf16 %v742_v28, %v742_v28 }
 0x117   : > { %v681_v15 = vpop.f32.mrf.mxu0  ;;  %v744_v31 = vpop.f32.mrf.mxu1 }
 0x118   : > { %749 = vst.msk [vmem:[#allocation2] sm:$0xf] %vm748_vm2, %v747_v14  ;;  %755 = vrot.lane.b32.xlu0 %v747_v14, %s2254_s30  ;;  %751 = vst.msk [vmem:[#allocation3] sm:$0xf] %vm748_vm2, %v2520_v30 }
 0x119   : > { %v1850_v16 = vpop.f32.mrf.mxu0  ;;  %v1858_v32 = vpop.f32.mrf.mxu1 }
 0x11b   : > { %v853_v18 = vpop.f32.mrf.mxu0 }
 0x11c   : > { %v854_v19 = vadd.f32 %v1767_v17, %v853_v18  ;;  %768 = vrot.lane.b32.xlu0 %v747_v14, %s2255_s20 }
 0x11d   : > { %v1865_v20 = vpop.f32.mrf.mxu0 }
 0x11e   : > { %v863_v21 = vpack.c.bf16 %v854_v19, %v854_v19 }
 0x11f   : > { %v856_v22 = vpop.f32.mrf.mxu0  ;;  %v888_v23 = vld [vmem:[#allocation2] sm:$0xf]  ;;  %v892_v40 = vld [vmem:[#allocation3] sm:$0xf] }
 0x120   : > { %865 = vst.msk [vmem:[#allocation4] sm:$0xf] %vm748_vm2, %v863_v21  ;;  %874 = vrot.lane.b32.xlu0 %v863_v21, %s2255_s20  ;;  %869 = vrot.lane.b32.xlu1 %v863_v21, %s2254_s30  ;;  %v1126_v43 = vsel %vm1124_vm3, %v892_v40, 0 }
 0x121   : > { %1868 = vmatpush3.bf16.xpose.msra.mxu1 %v888_v23  ;;  %v1866_v24 = vpop.f32.mrf.mxu0 }
 0x122   : > { %1879 = vmatprep.subr.bf16.mxu1 %v2251_v0 }
 0x124   : > { %778 = vrot.lane.b32.xlu1 %v747_v14, %s2256_s19 }
 0x127   : > { %v884_v25 = vld [vmem:[#allocation4] sm:$0xf] }
 0x128   : > { %879 = vrot.lane.b32.xlu1 %v863_v21, %s2256_s19  ;;  %1870 = vmatmul.mubr.bf16.vlgmr.msra.gmra.mxu1 %v884_v25 }
 0x129   : > { %1881 = vmatprep.mubr.msk.bf16.mxu1 %vm2252_vm0, %v2251_v0 }
 0x12c   : > { %763 = vrot.lane.b32.xlu1 %v2520_v30, %s2254_s30 }
 0x18a   : > { %v756_v33 = vpop.permute.xlu0 %755 }
 0x18b   : > { %759 = vst.msk [vmem:[#allocation2 + $0x4] sm:$0xf] %vm748_vm2, %v756_v33 }
 0x18e   : > { %v769_v34 = vpop.permute.xlu0 %768 }
 0x18f   : > { %772 = vst.msk [vmem:[#allocation2 + $0x8] sm:$0xf] %vm748_vm2, %v769_v34 }
 0x192   : > { %v875_v35 = vpop.permute.xlu0 %874  ;;  %v870_v36 = vpop.permute.xlu1 %869  ;;  %v889_v37 = vld [vmem:[#allocation2 + $0x4] sm:$0xf] }
 0x193   : > { %878 = vst.msk [vmem:[#allocation4 + $0x8] sm:$0xf] %vm748_vm2, %v875_v35  ;;  %873 = vst.msk [vmem:[#allocation4 + $0x4] sm:$0xf] %vm748_vm2, %v870_v36  ;;  %1874 = vmatpush3.bf16.xpose.msra.mxu0 %v889_v37 }
 0x194   : > { %1885 = vmatprep.subr.bf16.mxu0 %v2251_v0 }
 0x196   : > { %v779_v38 = vpop.permute.xlu1 %778  ;;  %v890_v39 = vld [vmem:[#allocation2 + $0x8] sm:$0xf] }
 0x197   : > { %782 = vst.msk [vmem:[#allocation2 + $0xc] sm:$0xf] %vm748_vm2, %v779_v38  ;;  %1880 = vmatpush3.bf16.xpose.msra.mxu1 %v890_v39 }
 0x198   : > { %1891 = vmatprep.subr.bf16.mxu1 %v2251_v0 }
 0x19a   : > { %v880_v41 = vpop.permute.xlu1 %879  ;;  %v885_v42 = vld [vmem:[#allocation4 + $0x4] sm:$0xf]  ;;  %v886_v44 = vld [vmem:[#allocation4 + $0x8] sm:$0xf] }
 0x19b   : > { %883 = vst.msk [vmem:[#allocation4 + $0xc] sm:$0xf] %vm748_vm2, %v880_v41  ;;  %1876 = vmatmul.mubr.bf16.vlgmr.msra.gmra.mxu0 %v885_v42 }
 0x19c   : > { %1887 = vmatprep.mubr.msk.bf16.mxu0 %vm2252_vm0, %v2251_v0 }
 0x19e   : > { %1882 = vmatmul.mubr.bf16.vlgmr.msra.gmra.mxu1 %v886_v44  ;;  %v891_v45 = vld [vmem:[#allocation2 + $0xc] sm:$0xf]  ;;  %v764_v53 = vpop.permute.xlu1 %763 }
 0x19f   : > { %1886 = vmatpush3.bf16.xpose.msra.mxu0 %v891_v45  ;;  %1892 = vmatpush3.bf16.msra.mxu1 %v1126_v43  ;;  %767 = vst.msk [vmem:[#allocation3 + $0x4] sm:$0xf] %vm748_vm2, %v764_v53 }
 0x1a0   : > { %1893 = vmatprep.mubr.msk.bf16.mxu1 %vm2252_vm0, %v2251_v0  ;;  %1897 = vmatprep.subr.bf16.mxu0 %v2251_v0 }
 0x1a1   : > { %1903 = vmatprep.subr.bf16.mxu1 %v2251_v0 }
 0x1a2   : > { %v887_v46 = vld [vmem:[#allocation4 + $0xc] sm:$0xf] }
 0x1a6   : > { %1888 = vmatmul.mubr.bf16.vlgmr.msra.gmra.mxu0 %v887_v46  ;;  %v893_v54 = vld [vmem:[#allocation3 + $0x4] sm:$0xf] }
 0x1a7   : > { %1899 = vmatprep.mubr.msk.bf16.mxu0 %vm2252_vm0, %v2251_v0  ;;  %v1172_v55 = vsel %vm1124_vm3, %v893_v54, 0 }
 0x1a8   : > { %1898 = vmatpush3.bf16.msra.mxu0 %v1172_v55 }
 0x1a9   : > { %1909 = vmatprep.subr.bf16.mxu0 %v2251_v0 }
 0x1e8   : > { %v930_v47 = vpop.f32.mrf.mxu1 }
 0x1e9   : > { %v1056_v48 = vmul.f32 0.35355338, %v930_v47 }
 0x1ea   : > { %v1871_v49 = vpop.f32.mrf.mxu1 }
 0x1eb   : > { %v1061_v50 = vsel %vm1060_vm4, %v1056_v48, -inf }
 0x1ec   : > { %1062 = vmax.xlane.f32.xlu0 %v1061_v50  ;;  %v933_v51 = vpop.f32.mrf.mxu1 }
 0x1ee   : > { %v1872_v52 = vpop.f32.mrf.mxu1 }
 0x25b   : > { %v970_v56 = vpop.f32.mrf.mxu0 }
 0x25c   : > { %v1057_v57 = vmul.f32 0.35355338, %v970_v56 }
 0x25d   : > { %v1877_v58 = vpop.f32.mrf.mxu0 }
 0x25e   : > { %v1010_v59 = vpop.f32.mrf.mxu1  ;;  %v1064_v60 = vsel %vm1060_vm4, %v1057_v57, -inf }
 0x25f   : > { %v1058_v61 = vmul.f32 0.35355338, %v1010_v59  ;;  %1065 = vmax.xlane.f32.xlu1 %v1064_v60  ;;  %v973_v62 = vpop.f32.mrf.mxu0 }
 0x260   : > { %v1883_v63 = vpop.f32.mrf.mxu1 }
 0x261   : > { %v1878_v1 = vpop.f32.mrf.mxu0  ;;  %v1067_v2 = vsel %vm1060_vm4, %v1058_v61, -inf }
 0x262   : > { %1068 = vmax.xlane.f32.xlu0 %v1067_v2  ;;  %v1013_v3 = vpop.f32.mrf.mxu1 }
 0x264   : > { %v1884_v5 = vpop.f32.mrf.mxu1 }
 0x266   : > { %v1050_v6 = vpop.f32.mrf.mxu0 }
 0x267   : > { %v1059_v7 = vmul.f32 0.35355338, %v1050_v6 }
 0x268   : > { %v1889_v8 = vpop.f32.mrf.mxu0 }
 0x269   : > { %v1070_v9 = vsel %vm1060_vm4, %v1059_v7, -inf }
 0x26a   : > { %v1053_v10 = vpop.f32.mrf.mxu0  ;;  %1071 = vmax.xlane.f32.xlu0 %v1070_v9 }
 0x26c   : > { %v1890_v11 = vpop.f32.mrf.mxu0 }
 0x270   : > { %783 = vrot.lane.b32.xlu1 %v2520_v30, %s2256_s19  ;;  %s595_s19 = sand.u32 1, %s2228_s25  }
 0x271   : > { %s1755_s21 = sshll.u32 %s595_s19, 3  ;;  %s1629_s2 = scalar_lea.sflag [#allocation8], %s595_s19 }
 0x272   : > { %s597_s23 = scalar_lea.vmem [#allocation12], %s1755_s21 }
 0x273   : > { %s1643_s30 = sshll.u32 %s597_s23, 4  ;;  %s1644_s30 = int_to_ptr.vmem [resolvable:$true] %s1643_s30 }
 0x274   : > { %s2160_s29 = scalar_lea.vmem %s1644_s30, 128 }
 0x275   : > { %v1063_v12 = vpop.xlane.xlu0 %1062  ;;  %p2161_p10 = scmp.ne.s32.totalorder %s1644_s30, %s2160_s29 }
 0x276   : > { %v1085_v13 = vsub.f32 %v1056_v48, %v1063_v12  ;;  %v1073_v46 = vsub.f32 -inf, %v1063_v12 }
 0x277   : > { %p2162_p11 = pnand %p2161_p10, %p2391_p4 }
 0x278   : > { %v1089_v14 = vmul.f32 1.442695, %v1085_v13  ;;  %v1077_v47 = vmul.f32 1.442695, %v1073_v46 }
 0x279   : > { %p2163_p13 = pneg %p2162_p11 }
 0x27a   : > { %2054 = vpow2.f32 %v1089_v14 }
 0x280   : > { %773 = vrot.lane.b32.xlu0 %v2520_v30, %s2255_s20  ;;  %s1641_s20 = scalar_lea.hbm %s2682_s17, %s1798_s22 }
 0x287   : > { %v2055_v15 = vpop.eup %2054 }
 0x288   : > { %v1117_v16 = vpack.c.bf16 %v2055_v15, %v2055_v15  ;;  %v1101_v36 = vsel %vm1060_vm4, %v2055_v15, 0.0 }
 0x28a   : > { %1894 = vmatmul.mubr.msk.bf16.vlgmr.msra.gmra.mxu1 %vm1060_vm4, %v1117_v16 }
 0x28b   : > { %1905 = vmatprep.mubr.msk.bf16.mxu1 %vm2252_vm0, %v2251_v0 }
 0x2e8   : > { %v1066_v17 = vpop.xlane.xlu1 %1065 }
 0x2e9   : > { %v1086_v18 = vsub.f32 %v1057_v57, %v1066_v17  ;;  %v1074_v53 = vsub.f32 -inf, %v1066_v17 }
 0x2eb   : > { %v1091_v19 = vmul.f32 1.442695, %v1086_v18  ;;  %v1069_v20 = vpop.xlane.xlu0 %1068  ;;  %v1079_v54 = vmul.f32 1.442695, %v1074_v53 }
 0x2ec   : > { %v1087_v21 = vsub.f32 %v1058_v61, %v1069_v20  ;;  %v784_v22 = vpop.permute.xlu1 %783  ;;  %v1075_v57 = vsub.f32 -inf, %v1069_v20 }
 0x2ed   : > { %787 = vst.msk [vmem:[#allocation3 + $0xc] sm:$0xf] %vm748_vm2, %v784_v22  ;;  %2056 = vpow2.f32 %v1091_v19  ;;  %v2046_v19 = vld [vmem:[#allocation9 + $0x8] sm:$0xff]  }
 0x2ee   : > { %v1093_v23 = vmul.f32 1.442695, %v1087_v21  ;;  %v1081_v60 = vmul.f32 1.442695, %v1075_v57  ;;  %v2051_v57 = vld [vmem:[%s2678_s13 + $0x10] sm:$0xff]  }
 0x2f0   : > { %2058 = vpow2.f32 %v1093_v23  ;;  %v2047_v23 = vld [vmem:[#allocation9] sm:$0xff]  }
 0x2f3   : > { %v1072_v24 = vpop.xlane.xlu0 %1071 }
 0x2f4   : > { %v1088_v25 = vsub.f32 %v1059_v7, %v1072_v24  ;;  %v895_v29 = vld [vmem:[#allocation3 + $0xc] sm:$0xf]  ;;  %v1076_v61 = vsub.f32 -inf, %v1072_v24 }
 0x2f5   : > { %v1264_v33 = vsel %vm1124_vm3, %v895_v29, 0 }
 0x2f6   : > { %v1095_v26 = vmul.f32 1.442695, %v1088_v25  ;;  %v1083_v62 = vmul.f32 1.442695, %v1076_v61 }
 0x2f7   : > { %v774_v27 = vpop.permute.xlu0 %773 }
 0x2f8   : > { %777 = vst.msk [vmem:[#allocation3 + $0x8] sm:$0xf] %vm748_vm2, %v774_v27  ;;  %2060 = vpow2.f32 %v1095_v26 }
 0x2f9   : > { %2062 = vpow2.f32 %v1077_v47 }
 0x2fa   : > { %v2057_v28 = vpop.eup %2056 }
 0x2fb   : > { %v1104_v30 = vsel %vm1060_vm4, %v2057_v28, 0.0  ;;  %v1118_v31 = vpack.c.bf16 %v2057_v28, %v2057_v28 }
 0x2fc   : > { %1105 = vadd.xlane.f32.xlu1 %v1104_v30 }
 0x2fd   : > { %v2059_v32 = vpop.eup %2058  ;;  %1900 = vmatmul.mubr.msk.bf16.vlgmr.msra.gmra.mxu0 %vm1060_vm4, %v1118_v31 }
 0x2fe   : > { %1910 = vmatpush3.bf16.msra.mxu0 %v1264_v33  ;;  %v1107_v34 = vsel %vm1060_vm4, %v2059_v32, 0.0  ;;  %1911 = vmatprep.mubr.msk.bf16.mxu0 %vm2252_vm0, %v2251_v0  ;;  %v1119_v38 = vpack.c.bf16 %v2059_v32, %v2059_v32 }
 0x2ff   : > { %v894_v35 = vld [vmem:[#allocation3 + $0x8] sm:$0xf]  ;;  %1108 = vadd.xlane.f32.xlu0 %v1107_v34  ;;  %1923 = vmatprep.subr.bf16.mxu0 %v2251_v0 }
 0x300   : > { %v1218_v37 = vsel %vm1124_vm3, %v894_v35, 0  ;;  %1102 = vadd.xlane.f32.xlu1 %v1101_v36 }
 0x301   : > { %1904 = vmatpush3.bf16.msra.mxu1 %v1218_v37 }
 0x302   : > { %1915 = vmatprep.subr.bf16.mxu1 %v2251_v0 }
 0x304   : > { %1906 = vmatmul.mubr.msk.bf16.vlgmr.msra.gmra.mxu1 %vm1060_vm4, %v1119_v38 }
 0x305   : > { %1919 = vmatprep.mubr.msk.bf16.mxu1 %vm2252_vm0, %v2251_v0  ;;  %v2061_v39 = vpop.eup %2060  ;;  %1916 = vmatpush3.bf16.msra.mxu1 %v2046_v19 }
 0x306   : > { %v1110_v40 = vsel %vm1060_vm4, %v2061_v39, 0.0  ;;  %v1120_v41 = vpack.c.bf16 %v2061_v39, %v2061_v39  ;;  %v2063_v48 = vpop.eup %2062  ;;  %1917 = vmatprep.subr.bf16.mxu1 %v2251_v0 }
 0x307   : > { %1111 = vadd.xlane.f32.xlu0 %v1110_v40  ;;  %v1097_v50 = vmul.f32 0.0, %v2063_v48 }
 0x308   : > { %1912 = vmatmul.mubr.msk.bf16.vlgmr.msra.gmra.mxu0 %vm1060_vm4, %v1120_v41 }
 0x309   : > { %1927 = vmatprep.mubr.msk.bf16.mxu0 %vm2252_vm0, %v2251_v0  ;;  %1918 = vmatpush3.bf16.msra.mxu1 %v2047_v23 }
 0x30a   : > { %1931 = vmatprep.subr.bf16.mxu1 %v2251_v0 }
 0x34a   : > { %v1162_v42 = vpop.f32.mrf.mxu1 }
 0x34b   : > { %v1306_v55 = vadd.f32 %v1162_v42, %v1097_v50  ;;  %v1779_v42 = vld [vmem:[%s2673_s8] ss:$0 sm:$0xff] }
 0x34c   : > { %v1895_v43 = vpop.f32.mrf.mxu1 }
 0x34e   : > { %v1165_v44 = vpop.f32.mrf.mxu1 }
 0x350   : > { %v1896_v45 = vpop.f32.mrf.mxu1 }
 0x385   : > { %v1106_v49 = vpop.xlane.xlu1 %1105 }
 0x388   : > { %v1109_v5 = vpop.xlane.xlu0 %1108 }
 0x389   : > { %v1103_v51 = vpop.xlane.xlu1 %1102 }
 0x38a   : > { %v1113_v52 = vadd.f32 %v1103_v51, %v1097_v50 }
 0x38c   : > { %2064 = vrcp.f32 %v1113_v52 }
 0x38d   : > { %2066 = vpow2.f32 %v1079_v54 }
 0x38e   : > { %2068 = vpow2.f32 %v1081_v60 }
 0x38f   : > { %2070 = vpow2.f32 %v1083_v62  ;;  %v1783_v62 = vld [vmem:[%s2674_s9] ss:$0 sm:$0xff] }
 0x390   : > { %v1112_v9 = vpop.xlane.xlu0 %1111 }
 0x399   : > { %v2065_v56 = vpop.eup %2064 }
 0x39a   : > { %v1314_v58 = vmul.f32 %v2065_v56, %v1306_v55  ;;  %v2067_v63 = vpop.eup %2066  ;;  %v2048_v55 = vld [vmem:[#allocation11 + $0x8] sm:$0xff]   ;;  %v2049_v56 = vld [vmem:[#allocation11] sm:$0xff]  }
 0x39b   : > { %v1098_v1 = vmul.f32 0.0, %v2067_v63  ;;  %v2069_v3 = vpop.eup %2068  ;;  %1924 = vmatpush3.bf16.msra.mxu0 %v2048_v55 }
 0x39c   : > { %v1318_v59 = vpack.c.bf16 %v1314_v58, %v1314_v58  ;;  %v1099_v6 = vmul.f32 0.0, %v2069_v3  ;;  %v2071_v7 = vpop.eup %2070  ;;  %1925 = vmatprep.subr.bf16.mxu0 %v2251_v0 }
 0x39d   : > { %v1114_v2 = vadd.f32 %v1106_v49, %v1098_v1  ;;  %v1100_v10 = vmul.f32 0.0, %v2071_v7  ;;  %v2053_v7 = vld [vmem:[%s2678_s13] sm:$0xff]  }
 0x39e   : > { %1319 = vst.msk [vmem:[#allocation5] sm:$0xf] %vm748_vm2, %v1318_v59  ;;  %v1115_v8 = vadd.f32 %v1109_v5, %v1099_v6 }
 0x39f   : > { %2072 = vrcp.f32 %v1114_v2  ;;  %v1116_v11 = vadd.f32 %v1112_v9, %v1100_v10  ;;  %1926 = vmatpush3.bf16.msra.mxu0 %v2049_v56 }
 0x3a0   : > { %2074 = vrcp.f32 %v1115_v8  ;;  %v1785_v8 = vld [vmem:[%s2677_s12] ss:$0 sm:$0xff] }
 0x3a1   : > { %2076 = vrcp.f32 %v1116_v11 }
 0x3ac   : > { %v2073_v14 = vpop.eup %2072 }
 0x3ad   : > { %v2075_v24 = vpop.eup %2074 }
 0x3ae   : > { %v2077_v32 = vpop.eup %2076 }
 0x3bd   : > { %v1208_v12 = vpop.f32.mrf.mxu0 }
 0x3be   : > { %v1307_v13 = vadd.f32 %v1208_v12, %v1098_v1  ;;  %v1784_v1 = vld [vmem:[%s2675_s10] ss:$0 sm:$0xff] }
 0x3bf   : > { %v1901_v15 = vpop.f32.mrf.mxu0 }
 0x3c0   : > { %v1315_v16 = vmul.f32 %v2073_v14, %v1307_v13 }
 0x3c1   : > { %v1211_v17 = vpop.f32.mrf.mxu0 }
 0x3c2   : > { %v1804_v18 = vpack.c.bf16 %v1315_v16, %v1315_v16 }
 0x3c3   : > { %v1902_v20 = vpop.f32.mrf.mxu0 }
 0x3c4   : > { %v1254_v21 = vpop.f32.mrf.mxu1  ;;  %1324 = vrot.lane.b32.xlu0 %v1804_v18, %s2257_s28  ;;  %s2260_s28 = smov [#allocation12]  }
 0x3c5   : > { %v1308_v22 = vadd.f32 %v1254_v21, %v1099_v6  ;;  %v2052_v6 = vld [vmem:[%s2678_s13 + $0x8] sm:$0xff]  }
 0x3c6   : > { %v1907_v25 = vpop.f32.mrf.mxu1 }
 0x3c7   : > { %v1316_v26 = vmul.f32 %v2075_v24, %v1308_v22 }
 0x3c8   : > { %v1257_v27 = vpop.f32.mrf.mxu1  ;;  %v1300_v29 = vpop.f32.mrf.mxu0 }
 0x3c9   : > { %v1805_v28 = vpack.c.bf16 %v1316_v26, %v1316_v26  ;;  %v1309_v30 = vadd.f32 %v1300_v29, %v1100_v10 }
 0x3ca   : > { %v1908_v31 = vpop.f32.mrf.mxu1  ;;  %v1913_v33 = vpop.f32.mrf.mxu0 }
 0x3cb   : > { %1333 = vrot.lane.b32.xlu1 %v1805_v28, %s2258_s24  ;;  %v1317_v34 = vmul.f32 %v2077_v32, %v1309_v30  ;;  %v1795_v32 = vld [vmem:[%s2680_s15] ss:$0 sm:$0xff]  ;;  %s2164_s24 = sshll.u32 %s2260_s28, 4  ;;  %s2165_s24 = int_to_ptr.vmem [resolvable:$false] %s2164_s24 }
 0x3cc   : > { %v1303_v35 = vpop.f32.mrf.mxu0  ;;  %s2166_s27 = scalar_lea.vmem %s2165_s24, 256  ;;  %p2167_p3 = scmp.lt.s32.totalorder %s1644_s30, %s2165_s24 }
 0x3cd   : > { %v1806_v36 = vpack.c.bf16 %v1317_v34, %v1317_v34  ;;  %v1796_v34 = vld [vmem:[%s2681_s16] ss:$0 sm:$0xff]  ;;  %p2168_p6 = scmp.lt.s32.totalorder %s2166_s27, %s2160_s29 }
 0x3ce   : > { %v1914_v37 = vpop.f32.mrf.mxu0 }
 0x3cf   : > { %1342 = vrot.lane.b32.xlu1 %v1806_v36, %s2259_s18  ;;  %p2169_p7 = por %p2168_p6, %p2167_p3 }
 0x3d1   : > { %p2170_p9 = pnand %p2169_p7, %p2163_p13 }
 0x436   : > { %v1325_v38 = vpop.permute.xlu0 %1324 }
 0x437   : > { %1328 = vst.msk [vmem:[#allocation5] sm:$0xf] %vm1327_vm5, %v1325_v38 }
 0x43d   : > { %v1334_v39 = vpop.permute.xlu1 %1333 }
 0x43e   : > { %1337 = vst.msk [vmem:[#allocation5] sm:$0xf] %vm1336_vm6, %v1334_v39 }
 0x441   : > { %v1343_v40 = vpop.permute.xlu1 %1342 }
 0x442   : > { %1346 = vst.msk [vmem:[#allocation5] sm:$0xf] %vm1345_vm7, %v1343_v40 }
 0x449   : > { %v1347_v41 = vld [vmem:[#allocation5] sm:$0xf] }
 0x44a   : > { %1920 = vmatmul.mubr.msk.bf16.vlgmr.msra.gmra.mxu1 %vm640_vm1, %v1347_v41 }
 0x44b   : > { %1939 = vmatprep.mubr.msk.bf16.mxu1 %vm2252_vm0, %v2251_v0 }
 0x50a   : > { %v1408_v43 = vpop.f32.mrf.mxu1 }
 0x50b   : > { %v1409_v44 = vadd.f32 %v1779_v42, %v1408_v43 }
 0x50c   : > { %v1921_v45 = vpop.f32.mrf.mxu1 }
 0x50d   : > { %v1414_v46 = vadd.f32 %v1409_v44, %v2475_v4  ;;  %v2050_v4 = vld [vmem:[%s2678_s13 + $0x18] sm:$0xff]  }
 0x50e   : > { %v1411_v47 = vpop.f32.mrf.mxu1  ;;  %1932 = vmatpush3.bf16.msra.mxu1 %v2050_v4 }
 0x50f   : > { %v1417_v48 = vsel %vm640_vm1, %v1414_v46, 0.0  ;;  %1933 = vmatprep.subr.bf16.mxu1 %v2251_v0 }
 0x510   : > { %1418 = vadd.xlane.f32.xlu0 %v1417_v48  ;;  %v1922_v49 = vpop.f32.mrf.mxu1 }
 0x512   : > { %1934 = vmatpush3.bf16.msra.mxu1 %v2051_v57 }
 0x513   : > { %1935 = vmatprep.subr.bf16.mxu1 %v2251_v0 }
 0x516   : > { %1936 = vmatpush3.bf16.msra.mxu1 %v2052_v6 }
 0x517   : > { %1937 = vmatprep.subr.bf16.mxu1 %v2251_v0  ;;  %v1789_v0 = vld [vmem:[%s2679_s14] ss:$0 sm:$0xff] }
 0x51a   : > { %1938 = vmatpush3.bf16.msra.mxu1 %v2053_v7 }
 0x599   : > { %v1419_v50 = vpop.xlane.xlu0 %1418 }
 0x59a   : > { %v1421_v51 = vmul.f32 0.03125, %v1419_v50 }
 0x59c   : > { %v1422_v52 = vsub.f32 %v1414_v46, %v1421_v51 }
 0x59e   : > { %v1423_v53 = vmul.f32 %v1422_v52, %v1422_v52 }
 0x5a0   : > { %v1424_v54 = vsel %vm640_vm1, %v1423_v53, 0.0 }
 0x5a1   : > { %1425 = vadd.xlane.f32.xlu1 %v1424_v54 }
 0x62a   : > { %v1426_v58 = vpop.xlane.xlu1 %1425 }
 0x62b   : > { %v1427_v59 = vmul.f32 0.03125, %v1426_v58 }
 0x62d   : > { %v1428_v60 = vadd.f32 1e-05, %v1427_v59 }
 0x62f   : > { %2078 = vrsqrt.f32 %v1428_v60 }
 0x63c   : > { %v2079_v61 = vpop.eup %2078 }
 0x63d   : > { %v1430_v63 = vmul.f32 %v2079_v61, %v1422_v52 }
 0x63f   : > { %v1437_v2 = vmul.f32 %v1783_v62, %v1430_v63 }
 0x641   : > { %v1444_v3 = vadd.f32 %v1784_v1, %v1437_v2 }
 0x643   : > { %v1445_v5 = vpack.c.bf16 %v1444_v3, %v1444_v3 }
 0x645   : > { %1928 = vmatmul.mubr.msk.bf16.vlgmr.msra.gmra.mxu0 %vm640_vm1, %v1445_v5 }
 0x705   : > { %v1506_v9 = vpop.f32.mrf.mxu0 }
 0x706   : > { %v1507_v10 = vadd.f32 %v1785_v8, %v1506_v9 }
 0x707   : > { %v1929_v11 = vpop.f32.mrf.mxu0 }
 0x708   : > { %v1512_v12 = vmax.f32 %v1507_v10, 0.0 }
 0x709   : > { %v1509_v13 = vpop.f32.mrf.mxu0 }
 0x70a   : > { %v1513_v14 = vpack.c.bf16 %v1512_v12, %v1512_v12 }
 0x70b   : > { %v1930_v15 = vpop.f32.mrf.mxu0 }
 0x70c   : > { %1940 = vmatmul.mubr.msk.bf16.vlgmr.msra.gmra.mxu1 %vm1553_vm8, %v1513_v14 }
 0x7cc   : > { %v1591_v16 = vpop.f32.mrf.mxu1 }
 0x7cd   : > { %v1592_v17 = vadd.f32 %v1789_v0, %v1591_v16 }
 0x7ce   : > { %v1941_v18 = vpop.f32.mrf.mxu1 }
 0x7cf   : > { %v1597_v19 = vadd.f32 %v1592_v17, %v1444_v3 }
 0x7d0   : > { %v1594_v20 = vpop.f32.mrf.mxu1 }
 0x7d1   : > { %v1600_v21 = vsel %vm640_vm1, %v1597_v19, 0.0 }
 0x7d2   : > { %1601 = vadd.xlane.f32.xlu0 %v1600_v21  ;;  %v1942_v22 = vpop.f32.mrf.mxu1 }
 0x85b   : > { %v1602_v23 = vpop.xlane.xlu0 %1601 }
 0x85c   : > { %v1603_v24 = vmul.f32 0.03125, %v1602_v23 }
 0x85e   : > { %v1604_v25 = vsub.f32 %v1597_v19, %v1603_v24 }
 0x860   : > { %v1605_v26 = vmul.f32 %v1604_v25, %v1604_v25 }
 0x862   : > { %v1606_v27 = vsel %vm640_vm1, %v1605_v26, 0.0 }
 0x863   : > { %1607 = vadd.xlane.f32.xlu0 %v1606_v27 }
 0x8ec   : > { %v1608_v28 = vpop.xlane.xlu0 %1607 }
 0x8ed   : > { %v1609_v29 = vmul.f32 0.03125, %v1608_v28 }
 0x8ef   : > { %v1610_v30 = vadd.f32 1e-05, %v1609_v29 }
 0x8f1   : > { %2080 = vrsqrt.f32 %v1610_v30 }
 0x8fe   : > { %v2081_v31 = vpop.eup %2080 }
 0x8ff   : > { %v1612_v33 = vmul.f32 %v2081_v31, %v1604_v25 }
 0x901   : > { %v1619_v35 = vmul.f32 %v1795_v32, %v1612_v33 }
 0x903   : > { %v1626_v36 = vadd.f32 %v1796_v34, %v1619_v35 }
 0x905   : > { %1627 = vst.msk [vmem:[%s597_s23] sm:$0xff] %vm640_vm1, %v1626_v36 }
 0x906   : > { %2173 = shalt.err (!%p2170_p9)
}
 0x907   : > { %s2174_s21 = scalar_lea.hbm %s1641_s20, 128  ;;  %s2178_s22 = scalar_lea.hbm %s2682_s17, 256 }
 0x908   : > { %p2175_p12 = scmp.ne.s32.totalorder %s1641_s20, %s2174_s21  ;;  %p2179_p2 = scmp.lt.s32.totalorder %s1641_s20, %s2682_s17 }
 0x909   : > { %p2180_p5 = scmp.lt.s32.totalorder %s2178_s22, %s2174_s21 }
 0x90a   : > { %p2176_p1 = pnand %p2175_p12, %p2391_p4 }
 0x90b   : > { %p2181_p0 = por %p2180_p5, %p2179_p2 }
 0x90c   : > { %p2177_p8 = pneg %p2176_p1 }
 0x90e   : > { %p2182_p10 = pnand %p2181_p0, %p2177_p8 }
 0x910   : > { %2185 = shalt.err (!%p2182_p10)
}
 0x911   : > { %1955 = dma.vmem_to_hbm [thread:$0]  (%p2391_p4), %s1644_s30, 128, %s1641_s20, %s1629_s2  }
 0x912 PF: > { %s2712_s26 = sld [smem:[#allocation19_spill]] }
 0x913   : > { %s2713_s29 = sld [smem:[#allocation16_spill]] }
 0x914   : > { %s2714_s28 = sld [smem:[#allocation21_spill]] }
 0x918   : > { %p1977_p11 = scmp.ge.s32.totalorder %s2712_s26, 2 }
 0x919   : > { %s1655_s24 = sand.u32 1, %s2713_s29  }
 0x91a   : > { %p2715_p13 = scmp.ne.s32.totalorder %s2714_s28, 0  ;;  %s1656_s27 = scalar_lea.sflag [#allocation8], %s1655_s24 }
 0x91c   : > { %p1968_p3 = pnand %p1977_p11, %p2715_p13 }
 0x91e   : > { %p1969_p6 = pneg %p1968_p3 }
 0x920   : > { %2219 = dma.done.wait (%p1969_p6), %s1656_s27, 128  }
 0x921   : > { %2221 = vsyncadd (%p1969_p6), %s1656_s27, 4294967168  ;;  %s32_s29 = sadd.s32 1, %s2712_s26   ;;  %s2716_s21 = sld [smem:[#allocation17_spill]] }
 0x922   : > { %p29_p7 = scmp.ge.s32.totalorder %s32_s29, 4   ;;  %s2717_s26 = sld [smem:[#allocation22_spill]] }
 0x923   : > { %s2718_s27 = sld [smem:[#allocation18_spill]]  ;;  %s2720_s24 = smov %s2228_s25 }
 0x924   : > { %s2719_s28 = sld [smem:[#allocation20_spill]]  ;;  %31 = sbr.rel (!%p29_p7) target bundleno = 11 (0xb), region = 150 }
 0x927   : > { %s2721_s25 = smov %s2716_s21 }
 0x929   :  { %1661 = vsyncpa [#allocation7], 1 }
 0x92a   :  { %1663 = vsyncpa [#allocation7 + $0x1], 1 }
 0x92b   :  { %1664 = vsyncpa [#allocation10], 1 }
 0x92c   :  { %1665 = vsyncpa [#allocation8], 1 }
 0x92d   :  { %1667 = vsyncpa [#allocation8 + $0x1], 1 }

</bundles_post_ra>
